<compile_context>
chip_gen: v7x
topology: tpu7x:2x2x1
jax: 0.10.0
libtpu: 0.0.40
codegen_flags: <defaults>
</compile_context>

<pallas_src>
import functools

import jax
import jax.numpy as jnp
import numpy as np
from jax.experimental import pallas as pl
from jax.experimental.pallas import tpu as pltpu


def _cdiv(a, b):
    return -(-a // b)


def _round_up(a, b):
    return _cdiv(a, b) * b


def _vmem_policy():
    """(tile working-set budget, scoped VMEM limit) derived per generation."""
    cap = 64 * 1024 * 1024                      # safe fallback (v7x-sized)
    try:
        info = pltpu.get_tpu_info()
        cap_attr = getattr(info, "vmem_capacity_bytes", None)
        if cap_attr:
            cap = int(cap_attr)
    except Exception:
        pass
    budget = cap // 2                           # v5e/v6e: 64 MiB, v7x: 32 MiB
    limit = min(int(cap * 0.8), 100 * 1024 * 1024)
    return budget, limit


def _pick_tiles(Do, Ho, Wo, C8, Co, in_bytes, out_bytes, budget_bytes, batch,
                force_td=None, force_tco=None):
    """Choose the D tile (td) and the Co tile (tco, multiple of 128)."""
    lanes = _round_up(Co, 128) // 128
    Hq, Wq = Ho + 1, Wo + 1

    # ---- Co tiling: only when the packed (single-buffered) weights are big.
    if force_tco is not None:
        tco = int(force_tco)
        n_co = _cdiv(lanes * 128, tco)
    else:
        n_co = 1
        while True:
            tco = 128 * _cdiv(lanes, n_co)
            if tco <= 128 or 8 * C8 * tco * in_bytes <= budget_bytes // 2:
                break
            n_co += 1
    cop = tco * n_co

    # ---- D tiling: largest td whose per-step working set fits the budget.
    def est(td):
        xm = td * Hq * Wq * C8 * in_bytes        # main input block
        xh = Hq * Wq * C8 * in_bytes             # halo plane
        wgt = 8 * C8 * tco * in_bytes            # weights, single-buffered
        rows = td * Ho * Wo
        o = rows * tco * out_bytes               # output block
        a = rows * tco * 4                       # f32 accumulator / dot results
        # 2x pipeline buffers for the input block + ~3x for in-kernel
        # temporaries (slab concat, tap slices, reshapes).
        return 5 * xm + 2 * xh + wgt + 2 * o + 2 * a

    if force_td is not None:
        td = max(1, min(int(force_td), Do))
    else:
        td = min(Do, 128)
        while td > 1 and est(td) > budget_bytes:
            td -= 1
        # Cost-aware megacore split: only split the D axis when each half is
        # still a reasonably large matmul (a pure loss on 1-TC chips and on
        # v7x when the per-core tiles would become tiny).
        if batch * _cdiv(Do, td) == 1 and (td // 2) * Ho * Wo >= 256:
            td = _cdiv(td, 2)
    n_i = _cdiv(Do, td)
    # TODO(synk): also tile H/W (and the 8-group K axis) for volumes whose
    # single padded plane exceeds the VMEM budget; not needed at these sizes.
    return td, n_i, tco, n_co, cop


# ----------------------------------------------------------------------------
# Pallas kernel: one output tile (1, td, Ho, Wo, TCo) built from 8 accumulating
# MXU dots over the 2x2x2 space-to-depth neighborhood, plus a fused bias add.
# ----------------------------------------------------------------------------
def _s2d_conv_kernel(xm_ref, xh_ref, wg_ref, b_ref, o_ref):
    _, td, Hq, Wq, C8 = xm_ref.shape
    Ho, Wo = Hq - 1, Wq - 1
    tco = o_ref.shape[-1]
    rows = td * Ho * Wo

    xm = xm_ref[...].reshape(td, Hq, Wq, C8)      # main D planes
    xh = xh_ref[...].reshape(1, Hq, Wq, C8)       # one halo plane
    slab = jnp.concatenate([xm, xh], axis=0)      # (td + 1, Hq, Wq, C8)

    acc = jnp.zeros((rows, tco), jnp.float32)
    g = 0
    for dd in range(2):
        for dh in range(2):
            for dw in range(2):
                piece = slab[dd:dd + td, dh:dh + Ho, dw:dw + Wo, :]
                acc = acc + jnp.dot(piece.reshape(rows, C8), wg_ref[g],
                                    preferred_element_type=jnp.float32)
                g += 1
    acc = acc + b_ref[...]                        # fused bias
    o_ref[...] = acc.reshape(1, td, Ho, Wo, tco).astype(o_ref.dtype)


def conv3d_s2_bias_pallas(x, w, b, *, compute_dtype=jnp.bfloat16, out_dtype=None,
                          leaky_slope=None, block_d=None, block_co=None):
    """Conv3d(kernel=3, stride=2, padding=1) + bias, optionally preceded by
    LeakyReLU(leaky_slope), on a channels-last input.

    x: (B, D, H, W, Ci)    w: (3, 3, 3, Ci, Co)    b: (Co,)
    Returns (B, Do, Ho, Wo, Co) in `out_dtype` (default: x.dtype).
    """
    B, D, H, W, Ci = x.shape
    Co = w.shape[-1]
    odt = x.dtype if out_dtype is None else np.dtype(out_dtype)
    in_bytes = np.dtype(compute_dtype).itemsize
    out_bytes = np.dtype(odt).itemsize

    Do, Ho, Wo = (D - 1) // 2 + 1, (H - 1) // 2 + 1, (W - 1) // 2 + 1
    Hq, Wq = Ho + 1, Wo + 1
    Cip = _round_up(Ci, 16)                       # keeps K = 8*Cip lane-dense
    C8 = 8 * Cip

    budget, vmem_limit = _vmem_policy()
    td, n_i, tco, n_co, cop = _pick_tiles(
        Do, Ho, Wo, C8, Co, in_bytes, out_bytes, budget, B,
        force_td=block_d, force_tco=block_co)
    Dq = td * n_i + 1                             # D cells of the s2d tensor

    # --- glue: LeakyReLU -> cast -> pad -> 2x2x2 space-to-depth (one pass) ---
    xa = x
    if leaky_slope is not None:
        xa = jnp.where(xa >= 0, xa, leaky_slope * xa)
    xa = xa.astype(compute_dtype)
    xp = jnp.pad(xa, ((0, 0),
                      (1, 2 * Dq - D - 1),
                      (1, 2 * Hq - H - 1),
                      (1, 2 * Wq - W - 1),
                      (0, Cip - Ci)))
    xs = xp.reshape(B, Dq, 2, Hq, 2, Wq, 2, Cip)
    xs = xs.transpose(0, 1, 3, 5, 2, 4, 6, 7).reshape(B, Dq, Hq, Wq, C8)

    # --- pack weights: (8 groups, 8*Cip, cop); invalid parity slots stay 0 ---
    wg = jnp.zeros((8, C8, cop), compute_dtype)
    wc = w.astype(compute_dtype)
    for dd in range(2):
        for dh in range(2):
            for dw in range(2):
                g = dd * 4 + dh * 2 + dw
                for pd in range(2):
                    for ph in range(2):
                        for pw in range(2):
                            kd, kh, kw = 2 * dd + pd, 2 * dh + ph, 2 * dw + pw
                            if kd > 2 or kh > 2 or kw > 2:
                                continue
                            c0 = (pd * 4 + ph * 2 + pw) * Cip
                            wg = wg.at[g, c0:c0 + Ci, :Co].set(wc[kd, kh, kw])
    b2 = jnp.pad(b.astype(jnp.float32), (0, cop - Co)).reshape(1, cop)

    rows_total = B * td * n_i * Ho * Wo
    cost = pl.CostEstimate(
        flops=int(2 * rows_total * 8 * C8 * cop),
        transcendentals=0,
        bytes_accessed=int(B * Dq * Hq * Wq * C8 * in_bytes
                           + 8 * C8 * cop * in_bytes
                           + rows_total * cop * out_bytes))

    out = pl.pallas_call(
        _s2d_conv_kernel,
        out_shape=jax.ShapeDtypeStruct((B, td * n_i, Ho, Wo, cop), odt),
        grid_spec=pltpu.PrefetchScalarGridSpec(
            num_scalar_prefetch=0,
            grid=(n_co, B, n_i),
            in_specs=[
                # main td-plane block of the space-to-depth input
                pl.BlockSpec((1, td, Hq, Wq, C8),
                             lambda j, bb, i: (bb, i, 0, 0, 0)),
                # one-plane D halo (block size 1 => block index == plane index)
                pl.BlockSpec((1, 1, Hq, Wq, C8),
                             lambda j, bb, i: (bb, i * td + td, 0, 0, 0)),
                # packed weights / bias: constant along (bb, i); single-buffered
                pl.BlockSpec((8, C8, tco), lambda j, bb, i: (0, 0, j),
                             pipeline_mode=pl.Buffered(1)),
                pl.BlockSpec((1, tco), lambda j, bb, i: (0, j),
                             pipeline_mode=pl.Buffered(1)),
            ],
            out_specs=pl.BlockSpec((1, td, Ho, Wo, tco),
                                   lambda j, bb, i: (bb, i, 0, 0, j)),
        ),
        compiler_params=pltpu.CompilerParams(
            dimension_semantics=("arbitrary", "parallel", "parallel"),
            vmem_limit_bytes=vmem_limit),
        cost_estimate=cost,
    )(xs, xs, wg, b2)

    # NOTE: these trims are small output-side copies that XLA fuses with the
    # consumer; callers that accept channels-last, 128-padded Co can skip them.
    return out[:, :Do, :, :, :Co]


# ----------------------------------------------------------------------------
# PatchMerging module: params + forward
# ----------------------------------------------------------------------------
def init_patch_merging_params(key, dim):
    """PyTorch-style Conv3d fan-in uniform init for Conv3d(dim, 2*dim, 3)."""
    kw, kb = jax.random.split(key)
    fan_in = dim * 27
    bound = 1.0 / np.sqrt(fan_in)
    w = jax.random.uniform(kw, (3, 3, 3, dim, 2 * dim), jnp.float32, -bound, bound)
    b = jax.random.uniform(kb, (2 * dim,), jnp.float32, -bound, bound)
    return {"reduction_w": w, "reduction_b": b}


def patch_merging_forward(params, x_ncdhw, D=None, H=None, W=None,
                          compute_dtype=jnp.bfloat16, out_dtype=None):
    """PatchMerging.forward: LeakyReLU(0.2) then Conv3d(dim->2*dim, 3, s=2, p=1).

    x_ncdhw: (B, dim, D, H, W).  The D/H/W args exist only for signature parity
    with the PyTorch module (unused there as well).  `self.norm` is never
    applied in the reference forward, so it is omitted.  Pass
    out_dtype=jnp.bfloat16 to also halve the output HBM write; the default
    keeps the PyTorch dtype semantics.
    """
    xc = jnp.transpose(x_ncdhw, (0, 2, 3, 4, 1))          # -> channels-last
    y = conv3d_s2_bias_pallas(xc, params["reduction_w"], params["reduction_b"],
                              compute_dtype=compute_dtype, out_dtype=out_dtype,
                              leaky_slope=0.2)
    return jnp.transpose(y, (0, 4, 1, 2, 3))              # -> NCDHW


# ----------------------------------------------------------------------------
# Pure-JAX references (for correctness checks)
# ----------------------------------------------------------------------------
def _conv3d_ref(x_cl, w, b):
    y = jax.lax.conv_general_dilated(
        x_cl, w, window_strides=(2, 2, 2), padding=[(1, 1)] * 3,
        dimension_numbers=("NDHWC", "DHWIO", "NDHWC"),
        precision=jax.lax.Precision.HIGHEST)
    return y + b


def patch_merging_ref(params, x_ncdhw):
    xc = jnp.transpose(x_ncdhw, (0, 2, 3, 4, 1))
    xr = jnp.where(xc >= 0, xc, 0.2 * xc)
    y = _conv3d_ref(xr, params["reduction_w"], params["reduction_b"])
    return jnp.transpose(y, (0, 4, 1, 2, 3))


if __name__ == "__main__":
    key = jax.random.PRNGKey(0)
    kp, kx = jax.random.split(key)

    # --- PatchMerging(dim=48): Conv3d(48 -> 96, k=3, s=2, p=1) after LeakyReLU
    dim = 48
    B, D, H, W = 2, 8, 8, 8
    params = init_patch_merging_params(kp, dim)
    x = jax.random.normal(kx, (B, dim, D, H, W), dtype=jnp.float32)

    fwd = jax.jit(functools.partial(patch_merging_forward,
                                    compute_dtype=jnp.bfloat16))
    out = jax.block_until_ready(fwd(params, x))
    assert out.shape == (B, 2 * dim, D // 2, H // 2, W // 2), out.shape

    fwd_f32 = jax.jit(functools.partial(patch_merging_forward,
                                        compute_dtype=jnp.float32))
    out_f32 = jax.block_until_ready(fwd_f32(params, x))
    ref = patch_merging_ref(params, x)
    np.testing.assert_allclose(np.asarray(out_f32), np.asarray(ref),
                               rtol=2e-3, atol=2e-3)
    np.testing.assert_allclose(np.asarray(out), np.asarray(ref),
                               rtol=3e-2, atol=3e-2)

    # --- extra coverage: odd spatial dims + multi-tile D halo (forced td) ----
    k1, k2, k3, k4 = jax.random.split(jax.random.PRNGKey(1), 4)
    ci_b, co_b = 40, 80
    xb = jax.random.normal(k1, (1, 7, 6, 5, ci_b), jnp.float32)
    wb = 0.05 * jax.random.normal(k2, (3, 3, 3, ci_b, co_b), jnp.float32)
    bb = jax.random.normal(k3, (co_b,), jnp.float32)
    run_b = jax.jit(functools.partial(conv3d_s2_bias_pallas,
                                      compute_dtype=jnp.float32, block_d=2))
    got_b = jax.block_until_ready(run_b(xb, wb, bb))
    np.testing.assert_allclose(np.asarray(got_b),
                               np.asarray(_conv3d_ref(xb, wb, bb)),
                               rtol=2e-3, atol=2e-3)

    # --- extra coverage: Co-tiled weights (forced 128-lane Co tile) ----------
    ci_c, co_c = 72, 144
    xc = jax.random.normal(k4, (1, 4, 4, 4, ci_c), jnp.float32)
    wc = 0.05 * jax.random.normal(k2, (3, 3, 3, ci_c, co_c), jnp.float32)
    bc = jax.random.normal(k3, (co_c,), jnp.float32)
    run_c = jax.jit(functools.partial(conv3d_s2_bias_pallas,
                                      compute_dtype=jnp.float32, block_co=128))
    got_c = jax.block_until_ready(run_c(xc, wc, bc))
    np.testing.assert_allclose(np.asarray(got_c),
                               np.asarray(_conv3d_ref(xc, wc, bc)),
                               rtol=2e-3, atol=2e-3)

    print("KERNEL_OK")
</pallas_src>

<mosaic_0001>
module attributes {stable_mosaic.version = 11 : i64} {
  func.func @_s2d_conv_kernel(%arg0: i32, %arg1: i32, %arg2: i32, %arg3: memref<1x4x5x5x384xbf16, #tpu.memory_space<vmem>>, %arg4: memref<1x1x5x5x384xbf16, #tpu.memory_space<vmem>>, %arg5: memref<8x384x128xbf16, #tpu.memory_space<vmem>>, %arg6: memref<1x128xf32, #tpu.memory_space<vmem>>, %arg7: memref<1x4x4x4x128xf32, #tpu.memory_space<vmem>>) attributes {dimension_semantics = [#tpu.dimension_semantics<arbitrary>, #tpu.dimension_semantics<parallel>, #tpu.dimension_semantics<parallel>], iteration_bounds = array<i64: 1, 2, 1>, scalar_prefetch = 0 : i64, scratch_operands = 0 : i64, tpu.core_type = #tpu.core_type<tc>, window_params = [{transform_indices = @transform_0, window_bounds = array<i64: 1, 4, 5, 5, 384>}, {transform_indices = @transform_1, window_bounds = array<i64: 1, 1, 5, 5, 384>}, {pipeline_mode = #tpu.pipeline_mode<synchronous>, transform_indices = @transform_2, window_bounds = array<i64: 8, 384, 128>}, {pipeline_mode = #tpu.pipeline_mode<synchronous>, transform_indices = @transform_3, window_bounds = array<i64: 1, 128>}, {transform_indices = @transform_4, window_bounds = array<i64: 1, 4, 4, 4, 128>}]} {
    %c0 = arith.constant 0 : index
    %c0_0 = arith.constant 0 : index
    %c0_1 = arith.constant 0 : index
    %c0_2 = arith.constant 0 : index
    %c0_3 = arith.constant 0 : index
    %0 = vector.load %arg3[%c0, %c0_0, %c0_1, %c0_2, %c0_3] : memref<1x4x5x5x384xbf16, #tpu.memory_space<vmem>>, vector<1x4x5x5x384xbf16>
    %1 = vector.shape_cast %0 : vector<1x4x5x5x384xbf16> to vector<4x5x5x384xbf16>
    %c0_4 = arith.constant 0 : index
    %c0_5 = arith.constant 0 : index
    %c0_6 = arith.constant 0 : index
    %c0_7 = arith.constant 0 : index
    %c0_8 = arith.constant 0 : index
    %2 = vector.load %arg4[%c0_4, %c0_5, %c0_6, %c0_7, %c0_8] : memref<1x1x5x5x384xbf16, #tpu.memory_space<vmem>>, vector<1x1x5x5x384xbf16>
    %3 = vector.shape_cast %2 : vector<1x1x5x5x384xbf16> to vector<1x5x5x384xbf16>
    %4 = tpu.concatenate %1, %3 in 0 : vector<4x5x5x384xbf16>, vector<1x5x5x384xbf16> -> vector<5x5x5x384xbf16>
    %cst = arith.constant 0.000000e+00 : f32
    %5 = vector.broadcast %cst : f32 to vector<64x128xf32>
    %6 = vector.extract_strided_slice %4 {offsets = [0, 0, 0, 0], sizes = [4, 4, 4, 384], strides = [1, 1, 1, 1]} : vector<5x5x5x384xbf16> to vector<4x4x4x384xbf16>
    %7 = vector.shape_cast %6 : vector<4x4x4x384xbf16> to vector<64x384xbf16>
    %c0_9 = arith.constant 0 : index
    %c0_10 = arith.constant 0 : index
    %c0_11 = arith.constant 0 : index
    %8 = vector.load %arg5[%c0_9, %c0_10, %c0_11] : memref<8x384x128xbf16, #tpu.memory_space<vmem>>, vector<1x384x128xbf16>
    %9 = vector.shape_cast %8 : vector<1x384x128xbf16> to vector<384x128xbf16>
    %cst_12 = arith.constant dense<0.000000e+00> : vector<64x128xf32>
    %10 = tpu.matmul %7, %9, %cst_12 {dimension_numbers = #tpu.dot_dimension_numbers<[1], [0], [0], [1], [0, 0, 1, 1], [], []>} : vector<64x384xbf16>, vector<384x128xbf16>, vector<64x128xf32> -> vector<64x128xf32>
    %11 = arith.addf %5, %10 : vector<64x128xf32>
    %12 = vector.extract_strided_slice %4 {offsets = [0, 0, 1, 0], sizes = [4, 4, 4, 384], strides = [1, 1, 1, 1]} : vector<5x5x5x384xbf16> to vector<4x4x4x384xbf16>
    %13 = vector.shape_cast %12 : vector<4x4x4x384xbf16> to vector<64x384xbf16>
    %c1 = arith.constant 1 : index
    %c0_13 = arith.constant 0 : index
    %c0_14 = arith.constant 0 : index
    %14 = vector.load %arg5[%c1, %c0_13, %c0_14] : memref<8x384x128xbf16, #tpu.memory_space<vmem>>, vector<1x384x128xbf16>
    %15 = vector.shape_cast %14 : vector<1x384x128xbf16> to vector<384x128xbf16>
    %cst_15 = arith.constant dense<0.000000e+00> : vector<64x128xf32>
    %16 = tpu.matmul %13, %15, %cst_15 {dimension_numbers = #tpu.dot_dimension_numbers<[1], [0], [0], [1], [0, 0, 1, 1], [], []>} : vector<64x384xbf16>, vector<384x128xbf16>, vector<64x128xf32> -> vector<64x128xf32>
    %17 = arith.addf %11, %16 : vector<64x128xf32>
    %18 = vector.extract_strided_slice %4 {offsets = [0, 1, 0, 0], sizes = [4, 4, 4, 384], strides = [1, 1, 1, 1]} : vector<5x5x5x384xbf16> to vector<4x4x4x384xbf16>
    %19 = vector.shape_cast %18 : vector<4x4x4x384xbf16> to vector<64x384xbf16>
    %c2 = arith.constant 2 : index
    %c0_16 = arith.constant 0 : index
    %c0_17 = arith.constant 0 : index
    %20 = vector.load %arg5[%c2, %c0_16, %c0_17] : memref<8x384x128xbf16, #tpu.memory_space<vmem>>, vector<1x384x128xbf16>
    %21 = vector.shape_cast %20 : vector<1x384x128xbf16> to vector<384x128xbf16>
    %cst_18 = arith.constant dense<0.000000e+00> : vector<64x128xf32>
    %22 = tpu.matmul %19, %21, %cst_18 {dimension_numbers = #tpu.dot_dimension_numbers<[1], [0], [0], [1], [0, 0, 1, 1], [], []>} : vector<64x384xbf16>, vector<384x128xbf16>, vector<64x128xf32> -> vector<64x128xf32>
    %23 = arith.addf %17, %22 : vector<64x128xf32>
    %24 = vector.extract_strided_slice %4 {offsets = [0, 1, 1, 0], sizes = [4, 4, 4, 384], strides = [1, 1, 1, 1]} : vector<5x5x5x384xbf16> to vector<4x4x4x384xbf16>
    %25 = vector.shape_cast %24 : vector<4x4x4x384xbf16> to vector<64x384xbf16>
    %c3 = arith.constant 3 : index
    %c0_19 = arith.constant 0 : index
    %c0_20 = arith.constant 0 : index
    %26 = vector.load %arg5[%c3, %c0_19, %c0_20] : memref<8x384x128xbf16, #tpu.memory_space<vmem>>, vector<1x384x128xbf16>
    %27 = vector.shape_cast %26 : vector<1x384x128xbf16> to vector<384x128xbf16>
    %cst_21 = arith.constant dense<0.000000e+00> : vector<64x128xf32>
    %28 = tpu.matmul %25, %27, %cst_21 {dimension_numbers = #tpu.dot_dimension_numbers<[1], [0], [0], [1], [0, 0, 1, 1], [], []>} : vector<64x384xbf16>, vector<384x128xbf16>, vector<64x128xf32> -> vector<64x128xf32>
    %29 = arith.addf %23, %28 : vector<64x128xf32>
    %30 = vector.extract_strided_slice %4 {offsets = [1, 0, 0, 0], sizes = [4, 4, 4, 384], strides = [1, 1, 1, 1]} : vector<5x5x5x384xbf16> to vector<4x4x4x384xbf16>
    %31 = vector.shape_cast %30 : vector<4x4x4x384xbf16> to vector<64x384xbf16>
    %c4 = arith.constant 4 : index
    %c0_22 = arith.constant 0 : index
    %c0_23 = arith.constant 0 : index
    %32 = vector.load %arg5[%c4, %c0_22, %c0_23] : memref<8x384x128xbf16, #tpu.memory_space<vmem>>, vector<1x384x128xbf16>
    %33 = vector.shape_cast %32 : vector<1x384x128xbf16> to vector<384x128xbf16>
    %cst_24 = arith.constant dense<0.000000e+00> : vector<64x128xf32>
    %34 = tpu.matmul %31, %33, %cst_24 {dimension_numbers = #tpu.dot_dimension_numbers<[1], [0], [0], [1], [0, 0, 1, 1], [], []>} : vector<64x384xbf16>, vector<384x128xbf16>, vector<64x128xf32> -> vector<64x128xf32>
    %35 = arith.addf %29, %34 : vector<64x128xf32>
    %36 = vector.extract_strided_slice %4 {offsets = [1, 0, 1, 0], sizes = [4, 4, 4, 384], strides = [1, 1, 1, 1]} : vector<5x5x5x384xbf16> to vector<4x4x4x384xbf16>
    %37 = vector.shape_cast %36 : vector<4x4x4x384xbf16> to vector<64x384xbf16>
    %c5 = arith.constant 5 : index
    %c0_25 = arith.constant 0 : index
    %c0_26 = arith.constant 0 : index
    %38 = vector.load %arg5[%c5, %c0_25, %c0_26] : memref<8x384x128xbf16, #tpu.memory_space<vmem>>, vector<1x384x128xbf16>
    %39 = vector.shape_cast %38 : vector<1x384x128xbf16> to vector<384x128xbf16>
    %cst_27 = arith.constant dense<0.000000e+00> : vector<64x128xf32>
    %40 = tpu.matmul %37, %39, %cst_27 {dimension_numbers = #tpu.dot_dimension_numbers<[1], [0], [0], [1], [0, 0, 1, 1], [], []>} : vector<64x384xbf16>, vector<384x128xbf16>, vector<64x128xf32> -> vector<64x128xf32>
    %41 = arith.addf %35, %40 : vector<64x128xf32>
    %42 = vector.extract_strided_slice %4 {offsets = [1, 1, 0, 0], sizes = [4, 4, 4, 384], strides = [1, 1, 1, 1]} : vector<5x5x5x384xbf16> to vector<4x4x4x384xbf16>
    %43 = vector.shape_cast %42 : vector<4x4x4x384xbf16> to vector<64x384xbf16>
    %c6 = arith.constant 6 : index
    %c0_28 = arith.constant 0 : index
    %c0_29 = arith.constant 0 : index
    %44 = vector.load %arg5[%c6, %c0_28, %c0_29] : memref<8x384x128xbf16, #tpu.memory_space<vmem>>, vector<1x384x128xbf16>
    %45 = vector.shape_cast %44 : vector<1x384x128xbf16> to vector<384x128xbf16>
    %cst_30 = arith.constant dense<0.000000e+00> : vector<64x128xf32>
    %46 = tpu.matmul %43, %45, %cst_30 {dimension_numbers = #tpu.dot_dimension_numbers<[1], [0], [0], [1], [0, 0, 1, 1], [], []>} : vector<64x384xbf16>, vector<384x128xbf16>, vector<64x128xf32> -> vector<64x128xf32>
    %47 = arith.addf %41, %46 : vector<64x128xf32>
    %48 = vector.extract_strided_slice %4 {offsets = [1, 1, 1, 0], sizes = [4, 4, 4, 384], strides = [1, 1, 1, 1]} : vector<5x5x5x384xbf16> to vector<4x4x4x384xbf16>
    %49 = vector.shape_cast %48 : vector<4x4x4x384xbf16> to vector<64x384xbf16>
    %c7 = arith.constant 7 : index
    %c0_31 = arith.constant 0 : index
    %c0_32 = arith.constant 0 : index
    %50 = vector.load %arg5[%c7, %c0_31, %c0_32] : memref<8x384x128xbf16, #tpu.memory_space<vmem>>, vector<1x384x128xbf16>
    %51 = vector.shape_cast %50 : vector<1x384x128xbf16> to vector<384x128xbf16>
    %cst_33 = arith.constant dense<0.000000e+00> : vector<64x128xf32>
    %52 = tpu.matmul %49, %51, %cst_33 {dimension_numbers = #tpu.dot_dimension_numbers<[1], [0], [0], [1], [0, 0, 1, 1], [], []>} : vector<64x384xbf16>, vector<384x128xbf16>, vector<64x128xf32> -> vector<64x128xf32>
    %53 = arith.addf %47, %52 : vector<64x128xf32>
    %c0_34 = arith.constant 0 : index
    %c0_35 = arith.constant 0 : index
    %54 = vector.load %arg6[%c0_34, %c0_35] : memref<1x128xf32, #tpu.memory_space<vmem>>, vector<1x128xf32>
    %55 = vector.broadcast %54 : vector<1x128xf32> to vector<64x128xf32>
    %56 = arith.addf %53, %55 : vector<64x128xf32>
    %57 = vector.shape_cast %56 : vector<64x128xf32> to vector<1x4x4x4x128xf32>
    %c0_36 = arith.constant 0 : index
    %c0_37 = arith.constant 0 : index
    %c0_38 = arith.constant 0 : index
    %c0_39 = arith.constant 0 : index
    %c0_40 = arith.constant 0 : index
    %58 = vector.load %arg7[%c0_36, %c0_37, %c0_38, %c0_39, %c0_40] : memref<1x4x4x4x128xf32, #tpu.memory_space<vmem>>, vector<1x4x4x4x128xf32>
    tpu.vector_store %arg7[%c0_36, %c0_37, %c0_38, %c0_39, %c0_40], %57 {strides = array<i32>} : memref<1x4x4x4x128xf32, #tpu.memory_space<vmem>>, vector<1x4x4x4x128xf32>,
    return
  }
  func.func @transform_0(%arg0: i32, %arg1: i32, %arg2: i32) -> (i32, i32, i32, i32, i32) {
    %c0_i32 = arith.constant 0 : i32
    %c0_i32_0 = arith.constant 0 : i32
    %c0_i32_1 = arith.constant 0 : i32
    %c0_i32_2 = arith.constant 0 : i32
    return %arg1, %arg2, %c0_i32, %c0_i32_0, %c0_i32_1 : i32, i32, i32, i32, i32
  }
  func.func @transform_1(%arg0: i32, %arg1: i32, %arg2: i32) -> (i32, i32, i32, i32, i32) {
    %c4_i32 = arith.constant 4 : i32
    %0 = arith.muli %arg2, %c4_i32 : i32
    %c4_i32_0 = arith.constant 4 : i32
    %1 = arith.addi %0, %c4_i32_0 : i32
    %c0_i32 = arith.constant 0 : i32
    %c0_i32_1 = arith.constant 0 : i32
    %c0_i32_2 = arith.constant 0 : i32
    %c0_i32_3 = arith.constant 0 : i32
    return %arg1, %1, %c0_i32, %c0_i32_1, %c0_i32_2 : i32, i32, i32, i32, i32
  }
  func.func @transform_2(%arg0: i32, %arg1: i32, %arg2: i32) -> (i32, i32, i32) {
    %c0_i32 = arith.constant 0 : i32
    %c0_i32_0 = arith.constant 0 : i32
    %c0_i32_1 = arith.constant 0 : i32
    return %c0_i32, %c0_i32_0, %arg0 : i32, i32, i32
  }
  func.func @transform_3(%arg0: i32, %arg1: i32, %arg2: i32) -> (i32, i32) {
    %c0_i32 = arith.constant 0 : i32
    %c0_i32_0 = arith.constant 0 : i32
    return %c0_i32, %arg0 : i32, i32
  }
  func.func @transform_4(%arg0: i32, %arg1: i32, %arg2: i32) -> (i32, i32, i32, i32, i32) {
    %c0_i32 = arith.constant 0 : i32
    %c0_i32_0 = arith.constant 0 : i32
    %c0_i32_1 = arith.constant 0 : i32
    return %arg1, %arg2, %c0_i32, %c0_i32_0, %arg0 : i32, i32, i32, i32, i32
  }
}

</mosaic_0001>

<bundles_post_ra>
// kernel: patch_merging_forward.1
= control target key start
LH: loop header
LB: loop body
LE: loop exit
PB: predicated region body
PF: predicated region fallthrough
CT: control target
= control target key end

     0   :  { %s6461_s15 = smov 0   ;;  %s6463_s16 = smov 0   ;;  %s7959_s0 = inlined_call_operand.vmem [shape: bf16[2,5,5,5,384], index: 0, kind: input, shape index: {}, may-alias: {0,1}]   ;;  %s7960_s1 = inlined_call_operand.vmem [shape: bf16[2,5,5,5,384], index: 1, kind: input, shape index: {}, may-alias: {0,1}]   ;;  %s7961_s2 = inlined_call_operand.vmem [shape: bf16[8,384,128], index: 2, kind: input, shape index: {}]   ;;  %s7962_s3 = inlined_call_operand.vmem [shape: f32[1,128], index: 3, kind: input, shape index: {}]   ;;  %s7963_s4 = inlined_call_operand.vmem [shape: f32[2,4,4,4,128], index: 4, kind: output, shape index: {}]  }
   0x1   :  { %s6465_s17 = smov 0  }
   0x2 LB: > { %s29_s18 = sadd.s32 1, %s6429_s16  ;;  %p4833_p0 = scmp.ge.s32.totalorder %s6433_s17, 1  ;;  %s6433_s17 = sphi %s6465_s17, %s14_s17   ;;  %s6429_s16 = sphi %s6463_s16, %s8033_s16   ;;  %s6425_s15 = sphi %s6461_s15, %s8032_s15  }
   0x3   : > { %p31_p1 = scmp.ge.s32.totalorder %s29_s18, 2  ;;  %p246_p2 = scmp.lt.s32.totalorder %s6433_s17, 3 }
   0x5   : > { %s8035_s18 = smov (%p31_p1, %s29_s18), 0  ;;  %p247_p3 = pnand %p4833_p0, %p246_p2 }
   0x7   : > { %250 = sbr.rel (%p247_p3) target bundleno = 549 (0x225), region = 36 }
   0xe   : > { %v6218_v0 = vld [vmem:[%s7961_s2 + $0x100] sm:$0xff]   ;;  %p316_p4 = scmp.lt.s32.totalorder %s6425_s15, 1  ;;  %v6221_v3 = vld [vmem:[%s7961_s2 + $0x108] sm:$0xff]   ;;  %v6224_v6 = vld [vmem:[%s7961_s2 + $0x110] sm:$0xff]   ;;  %vm753_vm0 = vsmask.f32 1280  ;;  %v1040_v49 = vlaneseq }
   0xf   : > { %v6219_v1 = vld [vmem:[%s7961_s2 + $0x140] sm:$0xff]   ;;  %5462 = vmatprep.subr.bf16.mxu0 %v6218_v0  ;;  %v6222_v4 = vld [vmem:[%s7961_s2 + $0x148] sm:$0xff]   ;;  %v6225_v7 = vld [vmem:[%s7961_s2 + $0x150] sm:$0xff]   ;;  %vm754_vm1 = vsmask.f32 3336 }
  0x10   : > { %v6220_v2 = vld [vmem:[%s7961_s2 + $0xc0] sm:$0xff]   ;;  %5878 = vmatprep.subr.bf16.mxu1 %v6219_v1  ;;  %s8037_s15 = smov (!%p316_p4, %s6425_s15), 1  ;;  %v6223_v5 = vld [vmem:[%s7961_s2 + $0xc8] sm:$0xff]   ;;  %v6226_v8 = vld [vmem:[%s7961_s2 + $0xd0] sm:$0xff]   ;;  %vm756_vm2 = vsmask.f32 5392 }
  0x11   : > { %5463 = vmatpush3.bf16.msra.mxu0 %v6220_v2  ;;  %5879 = vmatpush3.bf16.msra.mxu1 %v6219_v1  ;;  %v6227_v9 = vld [vmem:[%s7961_s2 + $0x118] sm:$0xff]   ;;  %v6230_v12 = vld [vmem:[%s7961_s2 + $0x120] sm:$0xff]   ;;  %v6233_v15 = vld [vmem:[%s7961_s2 + $0x128] sm:$0xff]   ;;  %s6190_s5 = smul.u32 300, %s8037_s15  ;;  %vm758_vm3 = vsmask.f32 7448 }
  0x12   : > { %5464 = vmatprep.subr.bf16.mxu0 %v6221_v3  ;;  %5880 = vmatprep.subr.bf16.mxu1 %v6222_v4  ;;  %v6228_v10 = vld [vmem:[%s7961_s2 + $0x158] sm:$0xff]   ;;  %v6231_v13 = vld [vmem:[%s7961_s2 + $0x160] sm:$0xff]   ;;  %v6234_v16 = vld [vmem:[%s7961_s2 + $0x168] sm:$0xff]   ;;  %s5461_s6 = sshll.u32 %s8037_s15, 6 }
  0x13   : > { %v6229_v11 = vld [vmem:[%s7961_s2 + $0xd8] sm:$0xff]   ;;  %v6232_v14 = vld [vmem:[%s7961_s2 + $0xe0] sm:$0xff]   ;;  %v6235_v17 = vld [vmem:[%s7961_s2 + $0xe8] sm:$0xff]   ;;  %s6547_s14 = scalar_lea.vmem %s7959_s0, %s6190_s5  ;;  %s5460_s30 = sadd.s32 240, %s6190_s5 }
  0x14   : > { %v6236_v18 = vld [vmem:[%s7961_s2 + $0x130] sm:$0xff]   ;;  %v6239_v21 = vld [vmem:[%s7961_s2 + $0x138] sm:$0xff]   ;;  %v6559_v23 = vld.sshfl [vmem:[%s6547_s14] sm:$0x5f pattern:$0x76325410]  ;;  %s7446_s12 = scalar_lea.vmem %s7960_s1, %s5460_s30  ;;  %s7921_s10 = scalar_lea.vmem %s7963_s4, %s5461_s6 }
  0x15   : > { %5465 = vmatpush3.bf16.msra.mxu0 %v6223_v5  ;;  %5881 = vmatpush3.bf16.msra.mxu1 %v6222_v4  ;;  %v6237_v19 = vld [vmem:[%s7961_s2 + $0x170] sm:$0xff]   ;;  %v6240_v22 = vld [vmem:[%s7961_s2 + $0x178] sm:$0xff]   ;;  %v6562_v24 = vld.sshfl [vmem:[%s6547_s14 + $0x8] sm:$0x13 pattern:$0x76325410] }
  0x16   : > { %5466 = vmatprep.subr.bf16.mxu0 %v6224_v6  ;;  %5882 = vmatprep.subr.bf16.mxu1 %v6225_v7  ;;  %v6238_v20 = vld [vmem:[%s7961_s2 + $0xf0] sm:$0xff]   ;;  %v6241_v25 = vld [vmem:[%s7961_s2 + $0xf8] sm:$0xff]   ;;  %v463_v27 = vcombine.low %v6559_v23, %v6562_v24  ;;  %v737_v28 = vcombine.high %v6559_v23, %v6562_v24  ;;  %vm6583_vm4 = vmor %vm753_vm0, %vm754_vm1 }
  0x17   : > { %v6568_v26 = vld.sshfl [vmem:[%s6547_s14 + $0xc] sm:$0x5f pattern:$0x76325410]  ;;  %v6242_v38 = vld [vmem:[%s7961_s2 + $0x40] sm:$0xff]   ;;  %vm6610_vm5 = vmor %vm6583_vm4, %vm756_vm2 }
  0x18   : > { %v6575_v29 = vld.sshfl [vmem:[%s6547_s14 + $0x14] sm:$0x13 pattern:$0x76325410]  ;;  %v761_v33 = vshrl.u32 %v463_v27, 16  ;;  %v764_v34 = vshll.u32 %v463_v27, 16  ;;  %vm6629_vm6 = vmor %vm6610_vm5, %vm758_vm3 }
  0x19   : > { %5467 = vmatpush3.bf16.msra.mxu0 %v6226_v8  ;;  %5883 = vmatpush3.bf16.msra.mxu1 %v6225_v7  ;;  %v6578_v30 = vld.sshfl [vmem:[%s6547_s14 + $0x18] sm:$0x5f pattern:$0x76325410]  ;;  %v478_v31 = vcombine.low %v6568_v26, %v6575_v29  ;;  %v738_v36 = vcombine.high %v6568_v26, %v6575_v29  ;;  %v770_v37 = vshll.u32 %v737_v28, 16  ;;  %v6623_v55 = vld [vmem:[%s7961_s2 + $0x80] sm:$0xff]  }
  0x1a   : > { %5468 = vmatprep.subr.bf16.mxu0 %v6227_v9  ;;  %5884 = vmatprep.subr.bf16.mxu1 %v6228_v10  ;;  %v6588_v35 = vld.sshfl [vmem:[%s6547_s14 + $0x20] sm:$0x13 pattern:$0x76325410]  ;;  %v763_v43 = vrot.slane %v761_v33, 6  ;;  %v766_v44 = vrot.slane %v764_v34, 7 }
  0x1b   : > { %v6598_v40 = vld.sshfl [vmem:[%s6547_s14 + $0x24] sm:$0x5f pattern:$0x76325410]  ;;  %v493_v41 = vcombine.low %v6578_v30, %v6588_v35  ;;  %v739_v42 = vcombine.high %v6578_v30, %v6588_v35  ;;  %v772_v47 = vrot.slane %v770_v37, 7  ;;  %v775_v48 = vshrl.u32 %v478_v31, 16 }
  0x1c   : > { %v6605_v45 = vld.sshfl [vmem:[%s6547_s14 + $0x2c] sm:$0x13 pattern:$0x76325410]  ;;  %v767_v53 = vor.u32 %v766_v44, %v763_v43  ;;  %v778_v54 = vshll.u32 %v478_v31, 16  ;;  %v784_v57 = vshll.u32 %v738_v36, 16 }
  0x1d   : > { %5469 = vmatpush3.bf16.msra.mxu0 %v6229_v11  ;;  %5885 = vmatpush3.bf16.msra.mxu1 %v6228_v10  ;;  %v508_v51 = vcombine.low %v6598_v40, %v6605_v45  ;;  %v740_v52 = vcombine.high %v6598_v40, %v6605_v45  ;;  %v777_v56 = vrot.slane %v775_v48, 6  ;;  %v789_v58 = vshrl.u32 %v493_v41, 16  ;;  %v6634_v8 = vld.sshfl [vmem:[%s6547_s14 + $0x3c] sm:$0x5f pattern:$0x76325410] }
  0x1e   : > { %5470 = vmatprep.subr.bf16.mxu0 %v6230_v12  ;;  %5886 = vmatprep.subr.bf16.mxu1 %v6231_v13  ;;  %v792_v59 = vshll.u32 %v493_v41, 16  ;;  %v768_v60 = vrot.slane %v767_v53, 2  ;;  %v780_v61 = vrot.slane %v778_v54, 7  ;;  %v798_v62 = vshll.u32 %v739_v42, 16  ;;  %v6379_v0 = vld [vmem:[%s7961_s2 + $0x4a8] sm:$0xff]  }
  0x1f   : > { %v803_v63 = vshrl.u32 %v508_v51, 16  ;;  %v786_v1 = vrot.slane %v784_v57, 7  ;;  %v791_v2 = vrot.slane %v789_v58, 6  ;;  %v806_v4 = vshll.u32 %v508_v51, 16 }
  0x20   : > { %v794_v3 = vrot.slane %v792_v59, 7  ;;  %v781_v5 = vor.u32 %v780_v61, %v777_v56  ;;  %v800_v6 = vrot.slane %v798_v62, 7  ;;  %v812_v11 = vshll.u32 %v740_v52, 16 }
  0x21   : > { %5471 = vmatpush3.bf16.msra.mxu0 %v6232_v14  ;;  %5887 = vmatpush3.bf16.msra.mxu1 %v6231_v13  ;;  %v805_v7 = vrot.slane %v803_v63, 6  ;;  %v808_v10 = vrot.slane %v806_v4, 7  ;;  %v773_v12 = vsel %vm6629_vm6, %v768_v60, %v772_v47  ;;  %v6435_v14 = vmov 1983009808  }
  0x22   : > { %5472 = vmatprep.subr.bf16.mxu0 %v6233_v15  ;;  %5888 = vmatprep.subr.bf16.mxu1 %v6234_v16  ;;  %v795_v9 = vor.u32 %v794_v3, %v791_v2  ;;  %v782_v13 = vrot.slane %v781_v5, 2  ;;  %v1038_v15 = vunpack.c.l.s4 %v6435_v14  ;;  %v6651_v28 = vld.sshfl [vmem:[%s6547_s14 + $0x50] sm:$0x13 pattern:$0x76325410] }
  0x23   : > { %v6662_v37 = vld.sshfl [vmem:[%s6547_s14 + $0x54] sm:$0x5f pattern:$0x76325410] }
  0x24   : > { %v1039_v27 = vunpack.c.0.s8 %v1038_v15  ;;  %v6667_v41 = vld.sshfl [vmem:[%s6547_s14 + $0x5c] sm:$0x13 pattern:$0x76325410] }
  0x25   : > { %5473 = vmatpush3.bf16.msra.mxu0 %v6235_v17  ;;  %5889 = vmatpush3.bf16.msra.mxu1 %v6234_v16  ;;  %v1041_v16 = vshrl.u32 %v1040_v49, 7  ;;  %v6639_v17 = vld.sshfl [vmem:[%s6547_s14 + $0x44] sm:$0x13 pattern:$0x76325410]  ;;  %v553_v48 = vcombine.low %v6662_v37, %v6667_v41  ;;  %v743_v49 = vcombine.high %v6662_v37, %v6667_v41 }
  0x26   : > { %5474 = vmatprep.subr.bf16.mxu0 %v6236_v18  ;;  %5890 = vmatprep.subr.bf16.mxu1 %v6237_v19  ;;  %v796_v18 = vrot.slane %v795_v9, 2  ;;  %v741_v31 = vcombine.high %v6634_v8, %v6639_v17  ;;  %v6678_v47 = vld.sshfl [vmem:[%s6547_s14 + $0x60] sm:$0x5f pattern:$0x76325410] }
  0x27   : > { %v6691_v57 = vld.sshfl [vmem:[%s6547_s14 + $0x68] sm:$0x13 pattern:$0x76325410] }
  0x28   : > { %v6657_v32 = vsel %vm6629_vm6, %v796_v18, %v800_v6  ;;  %v568_v58 = vcombine.low %v6678_v47, %v6691_v57  ;;  %v744_v59 = vcombine.high %v6678_v47, %v6691_v57  ;;  %v845_v6 = vshrl.u32 %v553_v48, 16 }
  0x29   : > { %5475 = vmatpush3.bf16.msra.mxu0 %v6238_v20  ;;  %5891 = vmatpush3.bf16.msra.mxu1 %v6237_v19  ;;  %v809_v19 = vor.u32 %v808_v10, %v805_v7  ;;  %v814_v20 = vrot.slane %v812_v11, 7 }
  0x2a   : > { %5476 = vmatprep.subr.bf16.mxu0 %v6239_v21  ;;  %5892 = vmatprep.subr.bf16.mxu1 %v6240_v22  ;;  %v6642_v21 = vld.sshfl [vmem:[%s6547_s14 + $0x48] sm:$0x5f pattern:$0x76325410]  ;;  %v847_v18 = vrot.slane %v845_v6, 6 }
  0x2b   : > { %v810_v33 = vrot.slane %v809_v19, 2  ;;  %v538_v42 = vcombine.low %v6642_v21, %v6651_v28  ;;  %v742_v43 = vcombine.high %v6642_v21, %v6651_v28  ;;  %v848_v19 = vshll.u32 %v553_v48, 16  ;;  %v6248_v48 = vld [vmem:[%s7961_s2 + $0x50] sm:$0xff]  }
  0x2d   : > { %5477 = vmatpush3.bf16.msra.mxu0 %v6241_v25  ;;  %5893 = vmatpush3.bf16.msra.mxu1 %v6240_v22  ;;  %v523_v22 = vcombine.low %v6634_v8, %v6639_v17  ;;  %v6648_v25 = vsel %vm6629_vm6, %v782_v13, %v786_v1  ;;  %v6675_v46 = vsel %vm6629_vm6, %v810_v33, %v814_v20  ;;  %v826_v1 = vshll.u32 %v741_v31, 16 }
  0x2e   : > { %5514 = vmatprep.subr.bf16.mxu0 %v6242_v38  ;;  %5902 = vmatprep.subr.bf16.mxu1 %v6623_v55  ;;  %v1033_v34 = vcombine.low %v773_v12, %v6648_v25  ;;  %v1034_v36 = vcombine.high %v773_v12, %v6648_v25  ;;  %v6664_v38 = vsub.s32 %v1039_v27, %v1041_v16  ;;  %v831_v2 = vshrl.u32 %v538_v42, 16  ;;  %v6244_v12 = vld [vmem:[%s7961_s2] sm:$0xff]   ;;  %v6245_v16 = vld [vmem:[%s7961_s2 + $0x48] sm:$0xff]  }
  0x2f   : > { %v817_v44 = vshrl.u32 %v523_v22, 16  ;;  %7989 = vst [vmem:[#allocation2_spill] sm:$0xff] %v6675_v46  ;;  %v820_v51 = vshll.u32 %v523_v22, 16  ;;  %v1035_v52 = vcombine.low %v6657_v32, %v6675_v46  ;;  %v1036_v54 = vcombine.high %v6657_v32, %v6675_v46 }
  0x30   : > { %v1043_v53 = vrot.slane %v1033_v34, %v6664_v38  ;;  %v1050_v56 = vrot.slane %v1034_v36, %v6664_v38  ;;  %v834_v4 = vshll.u32 %v538_v42, 16  ;;  %v840_v5 = vshll.u32 %v742_v43, 16 }
  0x31   : > { %v819_v60 = vrot.slane %v817_v44, 6  ;;  %v822_v61 = vrot.slane %v820_v51, 7  ;;  %v1057_v62 = vrot.slane %v1035_v52, %v6664_v38  ;;  %v1064_v63 = vrot.slane %v1036_v54, %v6664_v38  ;;  %v6247_v44 = vld [vmem:[%s7961_s2 + $0x8] sm:$0xff]  }
  0x32   : > { %v828_v11 = vrot.slane %v826_v1, 7  ;;  %v833_v14 = vrot.slane %v831_v2, 6  ;;  %v836_v15 = vrot.slane %v834_v4, 7  ;;  %v854_v20 = vshll.u32 %v743_v49, 16 }
  0x33   : > { %v823_v3 = vor.u32 %v822_v61, %v819_v60  ;;  %v1066_v7 = vcombine.high %v1043_v53, %v1057_v62  ;;  %v1065_v9 = vcombine.low %v1043_v53, %v1057_v62  ;;  %v1067_v10 = vcombine.low %v1050_v56, %v1064_v63  ;;  %v6250_v63 = vld [vmem:[%s7961_s2 + $0x10] sm:$0xff]   ;;  %v6726_v1 = vld.sshfl [vmem:[%s6547_s14 + $0x80] sm:$0x13 pattern:$0x76325410] }
  0x34   : > { %v859_v22 = vshrl.u32 %v568_v58, 16  ;;  %v837_v27 = vor.u32 %v836_v15, %v833_v14  ;;  %v842_v31 = vrot.slane %v840_v5, 7  ;;  %v862_v33 = vshll.u32 %v568_v58, 16 }
  0x35   : > { %v824_v13 = vrot.slane %v823_v3, 2  ;;  %1361 = vmatprep.mubr.bf16.mxu0 %v1066_v7  ;;  %5894 = vmatprep.mubr.bf16.mxu1 %v1067_v10  ;;  %v868_v34 = vshll.u32 %v744_v59, 16  ;;  %v850_v42 = vrot.slane %v848_v19, 7  ;;  %v856_v51 = vrot.slane %v854_v20, 7  ;;  %v6251_v3 = vld [vmem:[%s7961_s2 + $0x58] sm:$0xff]   ;;  %v6254_v19 = vld [vmem:[%s7961_s2 + $0x60] sm:$0xff]  }
  0x36   : > { %1362 = vmatmul.mubr.bf16.vlgmr.msra.gmra.mrb[0].mxu0 %v1065_v9  ;;  %v861_v43 = vrot.slane %v859_v22, 6  ;;  %v838_v49 = vrot.slane %v837_v27, 2  ;;  %v864_v52 = vrot.slane %v862_v33, 7 }
  0x37   : > { %v829_v36 = vsel %vm6629_vm6, %v824_v13, %v828_v11  ;;  %5515 = vmatpush3.bf16.msra.mxu0 %v6244_v12  ;;  %v870_v53 = vrot.slane %v868_v34, 7  ;;  %v851_v54 = vor.u32 %v850_v42, %v847_v18  ;;  %v6718_v59 = vld.sshfl [vmem:[%s6547_s14 + $0x78] sm:$0x5f pattern:$0x76325410] }
  0x38   : > { %5516 = vmatprep.subr.bf16.mxu0 %v6245_v16  ;;  %v6715_v56 = vsel %vm6629_vm6, %v838_v49, %v842_v31  ;;  %v865_v58 = vor.u32 %v864_v52, %v861_v43  ;;  %7990 = vst [vmem:[#allocation3_spill] sm:$0xff] %v6718_v59  ;;  %v6732_v4 = vld.sshfl [vmem:[%s6547_s14 + $0x84] sm:$0x5f pattern:$0x76325410]  ;;  %v583_v5 = vcombine.low %v6718_v59, %v6726_v1  ;;  %v6253_v11 = vld [vmem:[%s7961_s2 + $0x18] sm:$0xff]  }
  0x39   : > { %v852_v60 = vrot.slane %v851_v54, 2  ;;  %v1069_v61 = vcombine.high %v829_v36, %v6715_v56  ;;  %v1068_v62 = vcombine.low %v829_v36, %v6715_v56  ;;  %v745_v6 = vcombine.high %v6718_v59, %v6726_v1  ;;  %v6748_v12 = vld.sshfl [vmem:[%s6547_s14 + $0x8c] sm:$0x13 pattern:$0x76325410] }
  0x3a   : > { %v866_v2 = vrot.slane %v865_v58, 2  ;;  %v6755_v14 = vld.sshfl [vmem:[%s6547_s14 + $0x90] sm:$0x5f pattern:$0x76325410]  ;;  %v598_v15 = vcombine.low %v6732_v4, %v6748_v12  ;;  %v746_v16 = vcombine.high %v6732_v4, %v6748_v12  ;;  %v873_v18 = vshrl.u32 %v583_v5, 16 }
  0x3b   : > { %5517 = vmatpush3.bf16.msra.mxu0 %v6247_v44  ;;  %v6740_v7 = vsel %vm6629_vm6, %v852_v60, %v856_v51  ;;  %v1085_v9 = vrot.slane %v1069_v61, %v6664_v38  ;;  %v1078_v10 = vrot.slane %v1068_v62, %v6664_v38  ;;  %v6769_v27 = vld.sshfl [vmem:[%s6547_s14 + $0x98] sm:$0x13 pattern:$0x76325410]  ;;  %v876_v31 = vshll.u32 %v583_v5, 16  ;;  %v6246_v49 = vld [vmem:[%s7961_s2 + $0x88] sm:$0xff]  }
  0x3c   : > { %5518 = vmatprep.subr.bf16.mxu0 %v6248_v48  ;;  %v6752_v13 = vsel %vm6629_vm6, %v866_v2, %v870_v53  ;;  %v882_v33 = vshll.u32 %v745_v6, 16  ;;  %v6772_v34 = vld.sshfl [vmem:[%s6547_s14 + $0x9c] sm:$0x5f pattern:$0x76325410]  ;;  %v613_v36 = vcombine.low %v6755_v14, %v6769_v27  ;;  %v747_v42 = vcombine.high %v6755_v14, %v6769_v27 }
  0x3d   : > { %7991 = vst [vmem:[#allocation4_spill] sm:$0xff] %v6752_v13  ;;  %v1071_v20 = vcombine.high %v6740_v7, %v6752_v13  ;;  %v1070_v22 = vcombine.low %v6740_v7, %v6752_v13  ;;  %7992 = vst [vmem:[#allocation5_spill] sm:$0xff] %v6772_v34  ;;  %v875_v43 = vrot.slane %v873_v18, 6  ;;  %v887_v44 = vshrl.u32 %v598_v15, 16  ;;  %v6256_v58 = vld [vmem:[%s7961_s2 + $0x20] sm:$0xff]  }
  0x3e   : > { %v6784_v52 = vld.sshfl [vmem:[%s6547_s14 + $0xa4] sm:$0x13 pattern:$0x76325410]  ;;  %v878_v53 = vrot.slane %v876_v31, 7  ;;  %v884_v54 = vrot.slane %v882_v33, 7 }
  0x3f   : > { %5519 = vmatpush3.bf16.msra.mxu0 %v6250_v63  ;;  %v1099_v48 = vrot.slane %v1071_v20, %v6664_v38  ;;  %v1092_v51 = vrot.slane %v1070_v22, %v6664_v38  ;;  %v628_v60 = vcombine.low %v6772_v34, %v6784_v52  ;;  %v748_v61 = vcombine.high %v6772_v34, %v6784_v52 }
  0x40   : > { %5520 = vmatprep.subr.bf16.mxu0 %v6251_v3  ;;  %v889_v62 = vrot.slane %v887_v44, 6  ;;  %v890_v63 = vshll.u32 %v598_v15, 16  ;;  %v879_v6 = vor.u32 %v878_v53, %v875_v43  ;;  %v896_v20 = vshll.u32 %v746_v16, 16 }
  0x41   : > { %v6793_v2 = vcombine.low %v1085_v9, %v1099_v48  ;;  %v6795_v3 = vcombine.high %v1078_v10, %v1092_v51  ;;  %v6797_v5 = vcombine.low %v1078_v10, %v1092_v51  ;;  %v901_v22 = vshrl.u32 %v613_v36, 16 }
  0x42   : > { %v892_v18 = vrot.slane %v890_v63, 7  ;;  %v904_v31 = vshll.u32 %v613_v36, 16  ;;  %v880_v33 = vrot.slane %v879_v6, 2  ;;  %v910_v44 = vshll.u32 %v747_v42, 16  ;;  %v6249_v36 = vld [vmem:[%s7961_s2 + $0x90] sm:$0xff]   ;;  %v6259_v6 = vld [vmem:[%s7961_s2 + $0x28] sm:$0xff]  }
  0x43   : > { %7993 = vst [vmem:[#allocation6_spill] sm:$0xff] %v6793_v2  ;;  %7994 = vst [vmem:[#allocation7_spill] sm:$0xff] %v6795_v3  ;;  %5521 = vmatpush3.bf16.msra.mxu0 %v6253_v11  ;;  %5895 = vmatmul.mubr.bf16.vlgmr.msra.gmra.mrb[0].mxu1 %v6793_v2  ;;  %v915_v15 = vshrl.u32 %v628_v60, 16  ;;  %v918_v9 = vshll.u32 %v628_v60, 16  ;;  %v898_v11 = vrot.slane %v896_v20, 7  ;;  %v903_v43 = vrot.slane %v901_v22, 6 }
  0x44   : > { %7995 = vst [vmem:[#allocation8_spill] sm:$0xff] %v6797_v5  ;;  %5522 = vmatprep.subr.bf16.mxu0 %v6254_v19  ;;  %1369 = vmatprep.mubr.bf16.mxu0 %v6795_v3  ;;  %v893_v10 = vor.u32 %v892_v18, %v889_v62  ;;  %v906_v16 = vrot.slane %v904_v31, 7  ;;  %v6257_v19 = vld [vmem:[%s7961_s2 + $0x68] sm:$0xff]   ;;  %v912_v42 = vrot.slane %v910_v44, 7  ;;  %v885_v51 = vsel %vm6629_vm6, %v880_v33, %v884_v54  ;;  %v6252_v31 = vld [vmem:[%s7961_s2 + $0x98] sm:$0xff]  }
  0x45   : > { %5903 = vmatpush3.bf16.msra.mxu1 %v6623_v55  ;;  %1370 = vmatmul.mubr.bf16.gmra.mrb[4].mxu0 %v6797_v5  ;;  %v917_v48 = vrot.slane %v915_v15, 6  ;;  %v920_v55 = vrot.slane %v918_v9, 7  ;;  %v924_v62 = vshll.u32 %v748_v61, 16  ;;  %v6258_v3 = vld [vmem:[%s7961_s2 + $0xa8] sm:$0xff]  }
  0x46   : > { %5904 = vmatprep.subr.bf16.mxu1 %v6246_v49  ;;  %v894_v53 = vrot.slane %v893_v10, 2  ;;  %v907_v60 = vor.u32 %v906_v16, %v903_v43  ;;  %v6815_v18 = vld.sshfl [vmem:[%s6547_s14 + $0xb4] sm:$0x5f pattern:$0x76325410] }
  0x47   : > { %5523 = vmatpush3.bf16.msra.mxu0 %v6256_v58  ;;  %v921_v63 = vor.u32 %v920_v55, %v917_v48  ;;  %7996 = vst [vmem:[#allocation9_spill] sm:$0xff] %v6815_v18  ;;  %v6260_v58 = vld [vmem:[%s7961_s2 + $0x70] sm:$0xff]   ;;  %v926_v20 = vrot.slane %v924_v62, 7 }
  0x48   : > { %5524 = vmatprep.subr.bf16.mxu0 %v6257_v19  ;;  %v6822_v54 = vsel %vm6629_vm6, %v894_v53, %v898_v11  ;;  %v908_v61 = vrot.slane %v907_v60, 2  ;;  %v6825_v22 = vld.sshfl [vmem:[%s6547_s14 + $0xbc] sm:$0x13 pattern:$0x76325410] }
  0x49   : > { %5905 = vmatpush3.bf16.msra.mxu1 %v6246_v49  ;;  %7997 = vst [vmem:[#allocation10_spill] sm:$0xff] %v6822_v54  ;;  %v922_v33 = vrot.slane %v921_v63, 2  ;;  %v1103_v44 = vcombine.low %v885_v51, %v6822_v54  ;;  %v6832_v15 = vld.sshfl [vmem:[%s6547_s14 + $0xc0] sm:$0x5f pattern:$0x76325410]  ;;  %v643_v49 = vcombine.low %v6815_v18, %v6825_v22  ;;  %v749_v9 = vcombine.high %v6815_v18, %v6825_v22 }
  0x4a   : > { %5906 = vmatprep.subr.bf16.mxu1 %v6249_v36  ;;  %v6840_v10 = vsel %vm6629_vm6, %v908_v61, %v912_v42  ;;  %v6843_v11 = vld.sshfl [vmem:[%s6547_s14 + $0xc8] sm:$0x13 pattern:$0x76325410]  ;;  %v1104_v43 = vcombine.high %v885_v51, %v6822_v54  ;;  %v6255_v42 = vld [vmem:[%s7961_s2 + $0xa0] sm:$0xff]  }
  0x4b   : > { %5525 = vmatpush3.bf16.msra.mxu0 %v6259_v6  ;;  %v6852_v48 = vsel %vm6629_vm6, %v922_v33, %v926_v20  ;;  %v1113_v55 = vrot.slane %v1103_v44, %v6664_v38  ;;  %v6859_v53 = vld.sshfl [vmem:[%s6547_s14 + $0xcc] sm:$0x5f pattern:$0x76325410]  ;;  %v658_v51 = vcombine.low %v6832_v15, %v6843_v11  ;;  %v750_v60 = vcombine.high %v6832_v15, %v6843_v11 }
  0x4c   : > { %5526 = vmatprep.subr.bf16.mxu0 %v6260_v58  ;;  %7998 = vst [vmem:[#allocation11_spill] sm:$0xff] %v6852_v48  ;;  %v1105_v62 = vcombine.low %v6840_v10, %v6852_v48  ;;  %v6868_v63 = vld.sshfl [vmem:[%s6547_s14 + $0xd4] sm:$0x13 pattern:$0x76325410]  ;;  %v929_v6 = vshrl.u32 %v643_v49, 16  ;;  %v1106_v61 = vcombine.high %v6840_v10, %v6852_v48  ;;  %v1120_v5 = vrot.slane %v1104_v43, %v6664_v38 }
  0x4d   : > { %5907 = vmatpush3.bf16.msra.mxu1 %v6249_v36  ;;  %v932_v58 = vshll.u32 %v643_v49, 16  ;;  %v6873_v20 = vld.sshfl [vmem:[%s6547_s14 + $0xd8] sm:$0x5f pattern:$0x76325410]  ;;  %v673_v33 = vcombine.low %v6859_v53, %v6868_v63  ;;  %v751_v44 = vcombine.high %v6859_v53, %v6868_v63  ;;  %v938_v36 = vshll.u32 %v749_v9, 16 }
  0x4e   : > { %5908 = vmatprep.subr.bf16.mxu1 %v6252_v31  ;;  %7999 = vst [vmem:[#allocation12_spill] sm:$0xff] %v6873_v20  ;;  %v943_v39 = vshrl.u32 %v658_v51, 16  ;;  %v1127_v50 = vrot.slane %v1105_v62, %v6664_v38  ;;  %v6881_v19 = vld.sshfl [vmem:[%s6547_s14 + $0xe0] sm:$0x13 pattern:$0x76325410] }
  0x4f   : > { %v931_v16 = vrot.slane %v929_v6, 6  ;;  %v934_v49 = vrot.slane %v932_v58, 7  ;;  %v688_v2 = vcombine.low %v6873_v20, %v6881_v19  ;;  %v752_v48 = vcombine.high %v6873_v20, %v6881_v19  ;;  %v6262_v43 = vld [vmem:[%s7961_s2 + $0x30] sm:$0xff]  }
  0x50   : > { %v940_v9 = vrot.slane %v938_v36, 7  ;;  %v945_v13 = vrot.slane %v943_v39, 6  ;;  %v6891_v62 = vcombine.high %v1113_v55, %v1127_v50  ;;  %v6893_v46 = vcombine.low %v1113_v55, %v1127_v50  ;;  %5527 = vmatpush3.bf16.msra.mxu0 %v6262_v43 }
  0x51   : > { %5909 = vmatpush3.bf16.msra.mxu1 %v6252_v31  ;;  %v935_v6 = vor.u32 %v934_v49, %v931_v16  ;;  %v946_v58 = vshll.u32 %v658_v51, 16  ;;  %v952_v18 = vshll.u32 %v750_v60, 16  ;;  %v957_v34 = vshrl.u32 %v673_v33, 16  ;;  %v6261_v60 = vld [vmem:[%s7961_s2 + $0xb0] sm:$0xff]  }
  0x52   : > { %5910 = vmatprep.subr.bf16.mxu1 %v6255_v42  ;;  %v960_v59 = vshll.u32 %v673_v33, 16  ;;  %v966_v54 = vshll.u32 %v751_v44, 16  ;;  %1377 = vmatprep.mubr.bf16.mxu0 %v6891_v62  ;;  %v971_v31 = vshrl.u32 %v688_v2, 16  ;;  %v974_v20 = vshll.u32 %v688_v2, 16  ;;  %v6263_v33 = vld [vmem:[%s7961_s2 + $0x78] sm:$0xff]  }
  0x53   : > { %v936_v36 = vrot.slane %v935_v6, 2  ;;  %v948_v39 = vrot.slane %v946_v58, 7  ;;  %1378 = vmatmul.mubr.bf16.gmra.mrb[8].mxu0 %v6893_v46  ;;  %v954_v50 = vrot.slane %v952_v18, 7  ;;  %v959_v16 = vrot.slane %v957_v34, 6  ;;  %5528 = vmatprep.subr.bf16.mxu0 %v6263_v33  ;;  %v6264_v33 = vld [vmem:[%s7961_s2 + $0xb8] sm:$0xff]  }
  0x54   : > { %v962_v55 = vrot.slane %v960_v59, 7  ;;  %v968_v51 = vrot.slane %v966_v54, 7  ;;  %v973_v49 = vrot.slane %v971_v31, 6  ;;  %v976_v6 = vrot.slane %v974_v20, 7  ;;  %v6265_v54 = vld [vmem:[%s7961_s2 + $0x38] sm:$0xff]  }
  0x55   : > { %5911 = vmatpush3.bf16.msra.mxu1 %v6255_v42  ;;  %v949_v44 = vor.u32 %v948_v39, %v945_v13  ;;  %v4944_v2 = vcombine.low %v6578_v30, %v6598_v40  ;;  %v980_v34 = vshll.u32 %v752_v48, 16  ;;  %v1134_v59 = vrot.slane %v1106_v61, %v6664_v38  ;;  %v6266_v40 = vld [vmem:[%s7961_s2 + $0x1c0] sm:$0xff]   ;;  %5529 = vmatpush3.bf16.msra.mxu0 %v6265_v54 }
  0x56   : > { %5912 = vmatprep.subr.bf16.mxu1 %v6258_v3  ;;  %v963_v18 = vor.u32 %v962_v55, %v959_v16  ;;  %v941_v58 = vsel %vm6629_vm6, %v936_v36, %v940_v9  ;;  %v977_v13 = vor.u32 %v976_v6, %v973_v49  ;;  %v4945_v20 = vcombine.low %v6588_v35, %v6605_v45 }
  0x57   : > { %v950_v42 = vrot.slane %v949_v44, 2  ;;  %v982_v43 = vrot.slane %v980_v34, 7  ;;  %v6919_v61 = vcombine.low %v1120_v5, %v1134_v59  ;;  %v8000_v39 = vcombine.low %v6559_v23, %v6568_v26  ;;  %5566 = vmatprep.subr.bf16.mxu0 %v6266_v40 }
  0x58   : > { %v964_v48 = vrot.slane %v963_v18, 2  ;;  %v978_v36 = vrot.slane %v977_v13, 2  ;;  %v6932_v16 = vrot.slane %v4944_v2, %v6664_v38  ;;  %v8001_v5 = vcombine.low %v6562_v24, %v6575_v29 }
  0x59   : > { %v6925_v31 = vrot.slane %v8000_v39, %v6664_v38  ;;  %5913 = vmatpush3.bf16.msra.mxu1 %v6258_v3  ;;  %v6929_v9 = vsel %vm6629_vm6, %v950_v42, %v954_v50  ;;  %5898 = vmatprep.mubr.bf16.mxu1 %v6919_v61  ;;  %v1490_v44 = vrot.slane %v4945_v20, %v6664_v38 }
  0x5a   : > { %v1476_v55 = vrot.slane %v8001_v5, %v6664_v38  ;;  %v6940_v23 = vsel %vm6629_vm6, %v964_v48, %v968_v51  ;;  %v1138_v3 = vcombine.low %v941_v58, %v6929_v9  ;;  %5914 = vmatprep.subr.bf16.mxu1 %v6261_v60  ;;  %v1139_v50 = vcombine.high %v941_v58, %v6929_v9 }
  0x5b   : > { %v6950_v24 = vsel %vm6629_vm6, %v978_v36, %v982_v43  ;;  %v4947_v51 = vcombine.low %v6639_v17, %v6651_v28  ;;  %v4949_v49 = vcombine.low %v6667_v41, %v6691_v57  ;;  %v4946_v17 = vcombine.low %v6634_v8, %v6642_v21  ;;  %v6267_v43 = vld [vmem:[%s7961_s2 + $0x200] sm:$0xff]  }
  0x5c   : > { %v1140_v6 = vcombine.low %v6940_v23, %v6950_v24  ;;  %v1148_v2 = vrot.slane %v1138_v3, %v6664_v38  ;;  %v1141_v18 = vcombine.high %v6940_v23, %v6950_v24  ;;  %v1155_v34 = vrot.slane %v1139_v50, %v6664_v38  ;;  %v4983_v50 = vld.sshfl [vmem:[%s6547_s14 + $0x38] sm:$0x13 pattern:$0x76325410] }
  0x5d   : > { %5915 = vmatpush3.bf16.msra.mxu1 %v6261_v60  ;;  %v1492_v58 = vcombine.high %v6925_v31, %v6932_v16  ;;  %v1493_v42 = vcombine.low %v1476_v55, %v1490_v44  ;;  %v1511_v13 = vrot.slane %v4947_v51, %v6664_v38  ;;  %v1525_v20 = vrot.slane %v4949_v49, %v6664_v38 }
  0x5e   : > { %v1162_v59 = vrot.slane %v1140_v6, %v6664_v38  ;;  %v1169_v54 = vrot.slane %v1141_v18, %v6664_v38  ;;  %5916 = vmatprep.subr.bf16.mxu1 %v6264_v33  ;;  %v4948_v8 = vcombine.low %v6662_v37, %v6678_v47  ;;  %v4951_v39 = vcombine.low %v6726_v1, %v6748_v12 }
  0x5f   : > { %v4953_v36 = vcombine.low %v6769_v27, %v6784_v52  ;;  %v6997_v1 = vcombine.low %v1511_v13, %v1525_v20  ;;  %v4955_v49 = vcombine.low %v6825_v22, %v6843_v11  ;;  %v4957_v6 = vcombine.low %v6868_v63, %v6881_v19  ;;  %v8004_v22 = vld [vmem:[#allocation10_spill] sm:$0xff] }
  0x60   : > { %v6971_v40 = vcombine.high %v1148_v2, %v1162_v59  ;;  %v6973_v48 = vcombine.low %v1148_v2, %v1162_v59  ;;  %v6975_v60 = vcombine.low %v1155_v34, %v1169_v54  ;;  %v1518_v51 = vrot.slane %v4948_v8, %v6664_v38  ;;  %v6268_v20 = vld [vmem:[%s7961_s2 + $0x180] sm:$0xff]   ;;  %v6273_v34 = vld [vmem:[%s7961_s2 + $0x210] sm:$0xff]  }
  0x61   : > { %5917 = vmatpush3.bf16.msra.mxu1 %v6264_v33  ;;  %v1504_v33 = vrot.slane %v4946_v17, %v6664_v38  ;;  %v1546_v2 = vrot.slane %v4951_v39, %v6664_v38  ;;  %v1560_v18 = vrot.slane %v4953_v36, %v6664_v38  ;;  %v1491_v13 = vcombine.low %v6925_v31, %v6932_v16  ;;  %v6270_v39 = vld [vmem:[%s7961_s2 + $0x208] sm:$0xff]   ;;  %v8006_v16 = vld [vmem:[#allocation5_spill] sm:$0xff] }
  0x62   : > { %8002 = vst [vmem:[#allocation13_spill] sm:$0xff] %v6971_v40  ;;  %8003 = vst [vmem:[#allocation14_spill] sm:$0xff] %v6973_v48  ;;  %1385 = vmatprep.mubr.bf16.mxu0 %v6971_v40  ;;  %5899 = vmatmul.mubr.bf16.gmra.mrb[4].mxu1 %v6975_v60  ;;  %v6269_v36 = vld [vmem:[%s7961_s2 + $0x1c8] sm:$0xff]   ;;  %v4952_v54 = vcombine.low %v6755_v14, %v8006_v16  ;;  %v1595_v59 = vrot.slane %v4957_v6, %v6664_v38  ;;  %v6286_v40 = vld [vmem:[%s7961_s2 + $0x1b0] sm:$0xff]  }
  0x63   : > { %1386 = vmatmul.mubr.bf16.gmra.mrb[12].mxu0 %v6973_v48  ;;  %5918 = vmatprep.mubr.bf16.mxu1 %v1493_v42  ;;  %v8005_v17 = vld [vmem:[#allocation3_spill] sm:$0xff]  ;;  %v7043_v8 = vcombine.low %v1546_v2, %v1560_v18  ;;  %v1581_v42 = vrot.slane %v4955_v49, %v6664_v38  ;;  %v6272_v49 = vld [vmem:[%s7961_s2 + $0x1d0] sm:$0xff]  }
  0x64   : > { %1787 = vmatprep.mubr.bf16.mxu0 %v1492_v58  ;;  %5926 = vmatprep.subr.bf16.mxu1 %v6267_v43  ;;  %v7034_v58 = vcombine.high %v1504_v33, %v1518_v51  ;;  %v4950_v31 = vcombine.low %v8005_v17, %v6732_v4  ;;  %v6271_v17 = vld [vmem:[%s7961_s2 + $0x188] sm:$0xff]   ;;  %v1553_v6 = vrot.slane %v4952_v54, %v6664_v38  ;;  %v6274_v2 = vld [vmem:[%s7961_s2 + $0x190] sm:$0xff]  }
  0x65   : > { %v7063_v18 = vcombine.low %v1581_v42, %v1595_v59  ;;  %v4982_v54 = vld.sshfl [vmem:[%s6547_s14 + $0x30] sm:$0x5f pattern:$0x76325410]  ;;  %v5041_v42 = vcombine.low %v6605_v45, %v4983_v50 }
  0x67   : > { %v2033_v45 = vrot.slane %v5041_v42, %v6664_v38 }
  0x6a   : > { %5919 = vmatmul.mubr.bf16.vlgmr.msra.gmra.mrb[0].mxu1 %v6997_v1 }
  0x6b   : > { %1788 = vmatmul.mubr.bf16.vlgmr.msra.gmra.mrb[16].mxu0 %v1491_v13  ;;  %5927 = vmatpush3.bf16.msra.mxu1 %v6267_v43  ;;  %v1539_v43 = vrot.slane %v4950_v31, %v6664_v38  ;;  %v7065_v13 = vcombine.low %v1504_v33, %v1518_v51  ;;  %v8007_v31 = vld [vmem:[#allocation9_spill] sm:$0xff]  ;;  %v8008_v33 = vld [vmem:[#allocation12_spill] sm:$0xff] }
  0x6c   : > { %5567 = vmatpush3.bf16.msra.mxu0 %v6268_v20  ;;  %5928 = vmatprep.subr.bf16.mxu1 %v6270_v39  ;;  %v6275_v20 = vld [vmem:[%s7961_s2 + $0x1d8] sm:$0xff]   ;;  %v4954_v44 = vcombine.low %v8007_v31, %v6832_v15  ;;  %v4956_v51 = vcombine.low %v6859_v53, %v8008_v33  ;;  %v6279_v31 = vld [vmem:[%s7961_s2 + $0x220] sm:$0xff]  }
  0x6d   : > { %5568 = vmatprep.subr.bf16.mxu0 %v6269_v36  ;;  %1795 = vmatprep.mubr.bf16.mxu0 %v7034_v58  ;;  %v6276_v36 = vld [vmem:[%s7961_s2 + $0x218] sm:$0xff]   ;;  %v7077_v59 = vcombine.high %v1539_v43, %v1553_v6  ;;  %v7101_v42 = vcombine.low %v1539_v43, %v1553_v6  ;;  %v6410_v43 = vld.sshfl [vmem:[%s6547_s14 + $0x24] sm:$0x5f pattern:$0x76325410] }
  0x6e   : > { %5922 = vmatprep.mubr.bf16.mxu1 %v7043_v8  ;;  %v5040_v6 = vcombine.low %v6410_v43, %v4982_v54 }
  0x6f   : > { %5929 = vmatpush3.bf16.msra.mxu1 %v6270_v39  ;;  %v8009_v39 = vcombine.low %v6575_v29, %v6588_v35  ;;  %v6278_v29 = vld [vmem:[%s7961_s2 + $0x1e0] sm:$0xff]   ;;  %v1574_v35 = vrot.slane %v4954_v44, %v6664_v38 }
  0x70   : > { %5569 = vmatpush3.bf16.msra.mxu0 %v6271_v17  ;;  %5930 = vmatprep.subr.bf16.mxu1 %v6273_v34  ;;  %v1907_v17 = vcombine.low %v4982_v54, %v4983_v50 }
  0x71   : > { %5570 = vmatprep.subr.bf16.mxu0 %v6272_v49  ;;  %v2019_v55 = vrot.slane %v8009_v39, %v6664_v38  ;;  %v6277_v49 = vld [vmem:[%s7961_s2 + $0x198] sm:$0xff]  }
  0x72   : > { %5923 = vmatmul.mubr.bf16.gmra.mrb[4].mxu1 %v7063_v18  ;;  %v2441_v5 = vshrl.u32 %v1907_v17, 16  ;;  %v2444_v3 = vshll.u32 %v1907_v17, 16 }
  0x73   : > { %1796 = vmatmul.mubr.bf16.gmra.mrb[20].mxu0 %v7065_v13  ;;  %5931 = vmatpush3.bf16.msra.mxu1 %v6273_v34  ;;  %v1588_v34 = vrot.slane %v4956_v51, %v6664_v38  ;;  %v2036_v39 = vcombine.low %v2019_v55, %v2033_v45  ;;  %v6281_v55 = vld [vmem:[%s7961_s2 + $0x1e8] sm:$0xff]   ;;  %v7116_v51 = vld.sshfl [vmem:[%s6547_s14 + $0x74] sm:$0x13 pattern:$0x76325410] }
  0x74   : > { %5571 = vmatpush3.bf16.msra.mxu0 %v6274_v2  ;;  %5932 = vmatprep.subr.bf16.mxu1 %v6276_v36  ;;  %v6280_v2 = vld [vmem:[%s7961_s2 + $0x1a0] sm:$0xff]   ;;  %v2443_v17 = vrot.slane %v2441_v5, 6  ;;  %v2446_v45 = vrot.slane %v2444_v3, 7  ;;  %v6284_v5 = vld [vmem:[%s7961_s2 + $0x1f0] sm:$0xff]   ;;  %v8010_v3 = vcombine.low %v6568_v26, %v6578_v30  ;;  %v8011_v30 = vcombine.low %v6732_v4, %v6755_v14  ;;  %v6289_v14 = vld [vmem:[%s7961_s2 + $0x1b8] sm:$0xff]  }
  0x75   : > { %5572 = vmatprep.subr.bf16.mxu0 %v6275_v20  ;;  %1803 = vmatprep.mubr.bf16.mxu0 %v7077_v59  ;;  %v6282_v20 = vld [vmem:[%s7961_s2 + $0x228] sm:$0xff]   ;;  %v7112_v44 = vcombine.high %v1574_v35, %v1588_v34  ;;  %v7146_v48 = vcombine.low %v1574_v35, %v1588_v34  ;;  %v6287_v35 = vld [vmem:[%s7961_s2 + $0x1f8] sm:$0xff]  }
  0x76   : > { %5942 = vmatprep.mubr.bf16.mxu1 %v2036_v39  ;;  %v7126_v39 = vld.sshfl [vmem:[%s6547_s14 + $0x6c] sm:$0x5f pattern:$0x76325410]  ;;  %v2447_v43 = vor.u32 %v2446_v45, %v2443_v17 }
  0x77   : > { %5933 = vmatpush3.bf16.msra.mxu1 %v6276_v36  ;;  %v2436_v36 = vcombine.high %v4982_v54, %v4983_v50  ;;  %v7136_v50 = vrot.slane %v8010_v3, %v6664_v38  ;;  %v7139_v54 = vrot.slane %v5040_v6, %v6664_v38  ;;  %v2082_v6 = vrot.slane %v8011_v30, %v6664_v38  ;;  %v7209_v30 = vld.sshfl [vmem:[%s6547_s14 + $0xb0] sm:$0x13 pattern:$0x76325410] }
  0x78   : > { %5573 = vmatpush3.bf16.msra.mxu0 %v6277_v49  ;;  %5934 = vmatprep.subr.bf16.mxu1 %v6279_v31  ;;  %v6283_v49 = vld [vmem:[%s7961_s2 + $0x1a8] sm:$0xff]   ;;  %v2448_v45 = vrot.slane %v2447_v43, 2 }
  0x79   : > { %5574 = vmatprep.subr.bf16.mxu0 %v6278_v29  ;;  %v6285_v29 = vld [vmem:[%s7961_s2 + $0x230] sm:$0xff]   ;;  %v2035_v34 = vcombine.high %v7136_v50, %v7139_v54  ;;  %v4988_v43 = vld.sshfl [vmem:[%s6547_s14 + $0xe4] sm:$0x5f pattern:$0x76325410] }
  0x7b   : > { %1804 = vmatmul.mubr.bf16.gmra.mrb[24].mxu0 %v7101_v42  ;;  %5935 = vmatpush3.bf16.msra.mxu1 %v6279_v31  ;;  %v2450_v31 = vshll.u32 %v2436_v36, 16 }
  0x7c   : > { %5575 = vmatpush3.bf16.msra.mxu0 %v6280_v2  ;;  %5936 = vmatprep.subr.bf16.mxu1 %v6282_v20  ;;  %v5045_v2 = vcombine.low %v6691_v57, %v7116_v51  ;;  %v6288_v57 = vld [vmem:[%s7961_s2 + $0x238] sm:$0xff]  }
  0x7d   : > { %5576 = vmatprep.subr.bf16.mxu0 %v6281_v55  ;;  %1811 = vmatprep.mubr.bf16.mxu0 %v7112_v44  ;;  %v7144_v55 = vld.sshfl [vmem:[%s6547_s14 + $0xa8] sm:$0x5f pattern:$0x76325410] }
  0x7e   : > { %v5048_v26 = vcombine.low %v8006_v16, %v7144_v55  ;;  %v5044_v16 = vcombine.low %v6678_v47, %v7126_v39  ;;  %v2068_v17 = vrot.slane %v5045_v2, %v6664_v38  ;;  %v6290_v47 = vld [vmem:[%s7961_s2 + $0x280] sm:$0xff]  }
  0x7f   : > { %5937 = vmatpush3.bf16.msra.mxu1 %v6282_v20  ;;  %v8012_v20 = vcombine.low %v6651_v28, %v6667_v41  ;;  %v6291_v28 = vld [vmem:[%s7961_s2 + $0x2c0] sm:$0xff]   ;;  %v5051_v41 = vcombine.low %v6843_v11, %v6868_v63  ;;  %v6294_v11 = vld [vmem:[%s7961_s2 + $0x2c8] sm:$0xff]   ;;  %v5052_v63 = vcombine.low %v8008_v33, %v4988_v43  ;;  %v5049_v33 = vcombine.low %v6784_v52, %v7209_v30 }
  0x80   : > { %5577 = vmatpush3.bf16.msra.mxu0 %v6283_v49  ;;  %5938 = vmatprep.subr.bf16.mxu1 %v6285_v29  ;;  %v2096_v4 = vrot.slane %v5048_v26, %v6664_v38  ;;  %v2452_v49 = vrot.slane %v2450_v31, 7  ;;  %v2061_v2 = vrot.slane %v5044_v16, %v6664_v38  ;;  %v6292_v26 = vld [vmem:[%s7961_s2 + $0x240] sm:$0xff]   ;;  %v2437_v52 = vcombine.high %v7126_v39, %v7116_v51 }
  0x81   : > { %5578 = vmatprep.subr.bf16.mxu0 %v6284_v5  ;;  %v2054_v36 = vrot.slane %v8012_v20, %v6664_v38  ;;  %v2131_v16 = vrot.slane %v5052_v63, %v6664_v38  ;;  %v6295_v20 = vld [vmem:[%s7961_s2 + $0x248] sm:$0xff]  }
  0x82   : > { %v7180_v5 = vcombine.high %v2082_v6, %v2096_v4  ;;  %v7182_v3 = vcombine.low %v2082_v6, %v2096_v4  ;;  %v7213_v6 = vsel %vm6629_vm6, %v2448_v45, %v2452_v49  ;;  %v4989_v4 = vld.sshfl [vmem:[%s6547_s14 + $0xec] sm:$0x13 pattern:$0x76325410] }
  0x83   : > { %1812 = vmatmul.mubr.bf16.gmra.mrb[28].mxu0 %v7146_v48  ;;  %5939 = vmatpush3.bf16.msra.mxu1 %v6285_v29  ;;  %v8013_v29 = vcombine.low %v6642_v21, %v6662_v37  ;;  %v8014_v21 = vcombine.low %v6832_v15, %v6859_v53  ;;  %v8015_v15 = vcombine.low %v6748_v12, %v6769_v27  ;;  %v8016_v27 = vld [vmem:[#allocation2_spill] sm:$0xff] }
  0x84   : > { %5579 = vmatpush3.bf16.msra.mxu0 %v6286_v40  ;;  %5940 = vmatprep.subr.bf16.mxu1 %v6288_v57  ;;  %v7195_v40 = vcombine.low %v2054_v36, %v2068_v17  ;;  %v2103_v12 = vrot.slane %v5049_v33, %v6664_v38  ;;  %v1952_v45 = vcombine.low %v4988_v43, %v4989_v4 }
  0x85   : > { %5580 = vmatprep.subr.bf16.mxu0 %v6287_v35  ;;  %2330 = vmatprep.mubr.bf16.mxu0 %v2035_v34  ;;  %v2047_v31 = vrot.slane %v8013_v29, %v6664_v38  ;;  %v2117_v37 = vrot.slane %v8014_v21, %v6664_v38  ;;  %v2034_v35 = vcombine.low %v7136_v50, %v7139_v54  ;;  %v6293_v50 = vld [vmem:[%s7961_s2 + $0x288] sm:$0xff]  }
  0x86   : > { %v1922_v34 = vcombine.low %v7126_v39, %v7116_v51  ;;  %v2089_v53 = vrot.slane %v8015_v15, %v6664_v38  ;;  %v5053_v49 = vcombine.low %v6881_v19, %v4989_v4  ;;  %v2439_v63 = vcombine.high %v4988_v43, %v4989_v4 }
  0x87   : > { %5941 = vmatpush3.bf16.msra.mxu1 %v6288_v57  ;;  %v2124_v57 = vrot.slane %v5051_v41, %v6664_v38  ;;  %v7231_v54 = vcombine.high %v2047_v31, %v2061_v2  ;;  %v7242_v36 = vcombine.high %v2117_v37, %v2131_v16  ;;  %v7244_v17 = vcombine.low %v2117_v37, %v2131_v16  ;;  %v6297_v41 = vld [vmem:[%s7961_s2 + $0x2d0] sm:$0xff]  }
  0x88   : > { %5581 = vmatpush3.bf16.msra.mxu0 %v6289_v14  ;;  %5950 = vmatprep.subr.bf16.mxu1 %v6291_v28  ;;  %v2548_v14 = vcombine.high %v8016_v27, %v7213_v6  ;;  %v2455_v51 = vshrl.u32 %v1922_v34, 16  ;;  %v2458_v39 = vshll.u32 %v1922_v34, 16  ;;  %v7253_v29 = vcombine.low %v2089_v53, %v2103_v12 }
  0x89   : > { %5618 = vmatprep.subr.bf16.mxu0 %v6290_v47  ;;  %v6296_v47 = vld [vmem:[%s7961_s2 + $0x290] sm:$0xff]   ;;  %v1937_v19 = vcombine.low %v7144_v55, %v7209_v30  ;;  %v2483_v21 = vshrl.u32 %v1952_v45, 16  ;;  %v2486_v37 = vshll.u32 %v1952_v45, 16  ;;  %v2492_v34 = vshll.u32 %v2439_v63, 16  ;;  %v6299_v45 = vld [vmem:[%s7961_s2 + $0x298] sm:$0xff]  }
  0x8a   : > { %5943 = vmatmul.mubr.bf16.vlgmr.msra.gmra.mrb[0].mxu1 %v7195_v40  ;;  %v8017_v33 = vcombine.high %v6648_v25, %v6657_v32  ;;  %v2576_v4 = vrot.slane %v2548_v14, %v6664_v38  ;;  %v7272_v12 = vcombine.low %v2047_v31, %v2061_v2  ;;  %v6301_v31 = vld [vmem:[%s7961_s2 + $0x258] sm:$0xff]  }
  0x8b   : > { %2331 = vmatmul.mubr.bf16.vlgmr.msra.gmra.mrb[32].mxu0 %v2034_v35  ;;  %5951 = vmatpush3.bf16.msra.mxu1 %v6291_v28  ;;  %v2138_v28 = vrot.slane %v5053_v49, %v6664_v38  ;;  %v7259_v35 = vshll.u32 %v2437_v52, 16  ;;  %v2485_v53 = vrot.slane %v2483_v21, 6  ;;  %v2488_v16 = vrot.slane %v2486_v37, 7 }
  0x8c   : > { %5619 = vmatpush3.bf16.msra.mxu0 %v6292_v26  ;;  %5952 = vmatprep.subr.bf16.mxu1 %v6294_v11  ;;  %v2562_v43 = vrot.slane %v8017_v33, %v6664_v38  ;;  %v6298_v26 = vld [vmem:[%s7961_s2 + $0x250] sm:$0xff]   ;;  %v2460_v52 = vrot.slane %v2458_v39, 7  ;;  %v2469_v49 = vshrl.u32 %v1937_v19, 16  ;;  %v2494_v14 = vrot.slane %v2492_v34, 7  ;;  %v6303_v39 = vld [vmem:[%s7961_s2 + $0x2e0] sm:$0xff]  }
  0x8d   : > { %5620 = vmatprep.subr.bf16.mxu0 %v6293_v50  ;;  %2338 = vmatprep.mubr.bf16.mxu0 %v7231_v54  ;;  %v7269_v15 = vcombine.low %v2124_v57, %v2138_v28  ;;  %v2457_v50 = vrot.slane %v2455_v51, 6  ;;  %v6300_v57 = vld [vmem:[%s7961_s2 + $0x2d8] sm:$0xff]   ;;  %v2489_v63 = vor.u32 %v2488_v16, %v2485_v53  ;;  %v2472_v28 = vshll.u32 %v1937_v19, 16 }
  0x8e   : > { %5946 = vmatprep.mubr.bf16.mxu1 %v7253_v29  ;;  %v2579_v2 = vcombine.low %v2562_v43, %v2576_v4  ;;  %v8018_v19 = vcombine.low %v6929_v9, %v6940_v23  ;;  %v2471_v37 = vrot.slane %v2469_v49, 6  ;;  %v2466_v43 = vrot.slane %v7259_v35, 7  ;;  %v6306_v35 = vld [vmem:[%s7961_s2 + $0x2e8] sm:$0xff]  }
  0x8f   : > { %5953 = vmatpush3.bf16.msra.mxu1 %v6294_v11  ;;  %v2490_v11 = vrot.slane %v2489_v63, 2  ;;  %v2461_v51 = vor.u32 %v2460_v52, %v2457_v50  ;;  %v2474_v34 = vrot.slane %v2472_v28, 7  ;;  %v8019_v53 = vcombine.high %v6929_v9, %v6940_v23  ;;  %v6305_v23 = vld [vmem:[%s7961_s2 + $0x2a8] sm:$0xff]   ;;  %v6309_v28 = vld [vmem:[%s7961_s2 + $0x2f0] sm:$0xff]  }
  0x90   : > { %5621 = vmatpush3.bf16.msra.mxu0 %v6295_v20  ;;  %5954 = vmatprep.subr.bf16.mxu1 %v6297_v41  ;;  %v6302_v20 = vld [vmem:[%s7961_s2 + $0x2a0] sm:$0xff]   ;;  %v2660_v21 = vrot.slane %v8018_v19, %v6664_v38  ;;  %v6307_v49 = vld [vmem:[%s7961_s2 + $0x268] sm:$0xff]   ;;  %v6312_v19 = vld [vmem:[%s7961_s2 + $0x2f8] sm:$0xff]  }
  0x91   : > { %5622 = vmatprep.subr.bf16.mxu0 %v6296_v47  ;;  %v2495_v47 = vsel %vm6629_vm6, %v2490_v11, %v2494_v14  ;;  %v2667_v16 = vrot.slane %v8019_v53, %v6664_v38  ;;  %v2462_v4 = vrot.slane %v2461_v51, 2  ;;  %v2475_v52 = vor.u32 %v2474_v34, %v2471_v37  ;;  %v6313_v53 = vld [vmem:[%s7961_s2 + $0x278] sm:$0xff]  }
  0x92   : > { %5947 = vmatmul.mubr.bf16.gmra.mrb[4].mxu1 %v7269_v15  ;;  %v2652_v33 = vcombine.low %v6950_v24, %v2495_v47  ;;  %v8020_v14 = vcombine.low %v6648_v25, %v6657_v32  ;;  %v6311_v25 = vld [vmem:[%s7961_s2 + $0x2b8] sm:$0xff]   ;;  %v8022_v37 = vcombine.high %v6715_v56, %v6740_v7 }
  0x93   : > { %2339 = vmatmul.mubr.bf16.gmra.mrb[36].mxu0 %v7272_v12  ;;  %5955 = vmatpush3.bf16.msra.mxu1 %v6297_v41  ;;  %v2438_v41 = vcombine.high %v7144_v55, %v7209_v30  ;;  %v6304_v55 = vld [vmem:[%s7961_s2 + $0x260] sm:$0xff]   ;;  %v2476_v11 = vrot.slane %v2475_v52, 2 }
  0x94   : > { %5623 = vmatpush3.bf16.msra.mxu0 %v6298_v26  ;;  %5956 = vmatprep.subr.bf16.mxu1 %v6300_v57  ;;  %v2653_v26 = vcombine.high %v6950_v24, %v2495_v47  ;;  %v2674_v30 = vrot.slane %v2652_v33, %v6664_v38  ;;  %v2547_v24 = vcombine.low %v8016_v27, %v7213_v6  ;;  %v6308_v6 = vld [vmem:[%s7961_s2 + $0x2b0] sm:$0xff]  }
  0x95   : > { %5624 = vmatprep.subr.bf16.mxu0 %v6299_v45  ;;  %2346 = vmatprep.mubr.bf16.mxu0 %v7180_v5  ;;  %v2478_v50 = vshll.u32 %v2438_v41, 16  ;;  %v2467_v27 = vsel %vm6629_vm6, %v2462_v4, %v2466_v43  ;;  %v6310_v47 = vld [vmem:[%s7961_s2 + $0x270] sm:$0xff]   ;;  %v2597_v34 = vrot.slane %v8022_v37, %v6664_v38  ;;  %v8023_v43 = vld [vmem:[#allocation11_spill] sm:$0xff]  ;;  %v6314_v4 = vld [vmem:[%s7961_s2 + $0x340] sm:$0xff]  }
  0x96   : > { %5966 = vmatprep.mubr.bf16.mxu1 %v2579_v2  ;;  %v2681_v9 = vrot.slane %v2653_v26, %v6664_v38  ;;  %v7320_v45 = vcombine.high %v2660_v21, %v2674_v30  ;;  %v2569_v2 = vrot.slane %v2547_v24, %v6664_v38  ;;  %v6328_v37 = vld [vmem:[%s7961_s2 + $0x320] sm:$0xff]  }
  0x97   : > { %5957 = vmatpush3.bf16.msra.mxu1 %v6300_v57  ;;  %v7322_v57 = vcombine.low %v2660_v21, %v2674_v30  ;;  %v2480_v51 = vrot.slane %v2478_v50, 7 }
  0x98   : > { %5625 = vmatpush3.bf16.msra.mxu0 %v6301_v31  ;;  %5958 = vmatprep.subr.bf16.mxu1 %v6303_v39  ;;  %v7327_v63 = vcombine.low %v2667_v16, %v2681_v9  ;;  %v2555_v31 = vrot.slane %v8020_v14, %v6664_v38  ;;  %v6315_v16 = vld [vmem:[%s7961_s2 + $0x380] sm:$0xff]   ;;  %v8025_v9 = vcombine.high %v8004_v22, %v6840_v10  ;;  %v6319_v14 = vld [vmem:[%s7961_s2 + $0x308] sm:$0xff]  }
  0x99   : > { %5626 = vmatprep.subr.bf16.mxu0 %v6302_v20  ;;  %v8021_v20 = vld [vmem:[#allocation4_spill] sm:$0xff]  ;;  %v2481_v41 = vsel %vm6629_vm6, %v2476_v11, %v2480_v51  ;;  %v8026_v11 = vcombine.low %v8004_v22, %v6840_v10  ;;  %v6323_v10 = vld [vmem:[%s7961_s2 + $0x358] sm:$0xff]  }
  0x9a   : > { %v2578_v32 = vcombine.high %v2555_v31, %v2569_v2  ;;  %v2582_v21 = vcombine.low %v8021_v20, %v2467_v27  ;;  %v2618_v26 = vcombine.high %v8023_v43, %v2481_v41  ;;  %v2577_v52 = vcombine.low %v2555_v31, %v2569_v2  ;;  %v6321_v31 = vld [vmem:[%s7961_s2 + $0x390] sm:$0xff]  }
  0x9b   : > { %2347 = vmatmul.mubr.bf16.gmra.mrb[40].mxu0 %v7182_v3  ;;  %5959 = vmatpush3.bf16.msra.mxu1 %v6303_v39  ;;  %v2583_v39 = vcombine.high %v8021_v20, %v2467_v27  ;;  %v2617_v27 = vcombine.low %v8023_v43, %v2481_v41  ;;  %v6320_v2 = vld [vmem:[%s7961_s2 + $0x350] sm:$0xff]   ;;  %v2625_v51 = vrot.slane %v8026_v11, %v6664_v38  ;;  %v7464_v43 = vld.sshfl [vmem:[%s7446_s12 + $0x18] sm:$0x5f pattern:$0x76325410] }
  0x9c   : > { %5627 = vmatpush3.bf16.msra.mxu0 %v6304_v55  ;;  %5960 = vmatprep.subr.bf16.mxu1 %v6306_v35  ;;  %v8024_v55 = vcombine.low %v6715_v56, %v6740_v7  ;;  %v2646_v50 = vrot.slane %v2618_v26, %v6664_v38  ;;  %v6318_v56 = vld [vmem:[%s7961_s2 + $0x388] sm:$0xff]   ;;  %v6337_v11 = vld [vmem:[%s7961_s2 + $0x338] sm:$0xff]  }
  0x9d   : > { %5628 = vmatprep.subr.bf16.mxu0 %v6305_v23  ;;  %2354 = vmatprep.mubr.bf16.mxu0 %v7242_v36  ;;  %v2611_v33 = vrot.slane %v2583_v39, %v6664_v38  ;;  %v2632_v23 = vrot.slane %v8025_v9, %v6664_v38  ;;  %v6317_v7 = vld [vmem:[%s7961_s2 + $0x348] sm:$0xff]   ;;  %v2639_v20 = vrot.slane %v2617_v27, %v6664_v38  ;;  %v6334_v9 = vld [vmem:[%s7961_s2 + $0x330] sm:$0xff]  }
  0x9e   : > { %v2590_v30 = vrot.slane %v8024_v55, %v6664_v38  ;;  %v7480_v55 = vld.sshfl [vmem:[%s7446_s12 + $0x14] sm:$0x13 pattern:$0x76325410] }
  0x9f   : > { %5961 = vmatpush3.bf16.msra.mxu1 %v6306_v35  ;;  %v2604_v35 = vrot.slane %v2582_v21, %v6664_v38  ;;  %v7378_v24 = vcombine.low %v2597_v34, %v2611_v33  ;;  %v7427_v22 = vcombine.high %v2625_v51, %v2639_v20  ;;  %v6326_v21 = vld [vmem:[%s7961_s2 + $0x360] sm:$0xff]   ;;  %v7449_v41 = vcombine.low %v2625_v51, %v2639_v20  ;;  %v6329_v34 = vld [vmem:[%s7961_s2 + $0x368] sm:$0xff]  }
  0xa0   : > { %5629 = vmatpush3.bf16.msra.mxu0 %v6307_v49  ;;  %5962 = vmatprep.subr.bf16.mxu1 %v6309_v28  ;;  %v6316_v49 = vld [vmem:[%s7961_s2 + $0x300] sm:$0xff]   ;;  %v6330_v33 = vld [vmem:[%s7961_s2 + $0x3a8] sm:$0xff]  }
  0xa1   : > { %5630 = vmatprep.subr.bf16.mxu0 %v6308_v6  ;;  %v7394_v6 = vcombine.high %v2590_v30, %v2604_v35  ;;  %v7416_v39 = vcombine.low %v2590_v30, %v2604_v35  ;;  %v7483_v30 = vld.sshfl [vmem:[%s7446_s12 + $0x20] sm:$0x13 pattern:$0x76325410] }
  0xa2   : > { %v6339_v51 = vld [vmem:[%s7961_s2 + $0x440] sm:$0xff]  }
  0xa3   : > { %2355 = vmatmul.mubr.bf16.gmra.mrb[44].mxu0 %v7244_v17  ;;  %5963 = vmatpush3.bf16.msra.mxu1 %v6309_v28  ;;  %v7398_v28 = vcombine.low %v2632_v23, %v2646_v50  ;;  %v3031_v23 = vcombine.low %v7464_v43, %v7483_v30  ;;  %v6336_v50 = vld [vmem:[%s7961_s2 + $0x3b8] sm:$0xff]  }
  0xa4   : > { %5631 = vmatpush3.bf16.msra.mxu0 %v6310_v47  ;;  %5964 = vmatprep.subr.bf16.mxu1 %v6312_v19  ;;  %v6322_v47 = vld [vmem:[%s7961_s2 + $0x310] sm:$0xff]  }
  0xa5   : > { %5632 = vmatprep.subr.bf16.mxu0 %v6311_v25  ;;  %2873 = vmatprep.mubr.bf16.mxu0 %v2578_v32  ;;  %v6325_v25 = vld [vmem:[%s7961_s2 + $0x318] sm:$0xff]   ;;  %v6327_v32 = vld [vmem:[%s7961_s2 + $0x3a0] sm:$0xff]  }
  0xa7   : > { %5965 = vmatpush3.bf16.msra.mxu1 %v6312_v19  ;;  %v6324_v19 = vld [vmem:[%s7961_s2 + $0x398] sm:$0xff]  }
  0xa8   : > { %5633 = vmatpush3.bf16.msra.mxu0 %v6313_v53  ;;  %5974 = vmatprep.subr.bf16.mxu1 %v6315_v16  ;;  %v6331_v53 = vld [vmem:[%s7961_s2 + $0x328] sm:$0xff]  }
  0xa9   : > { %5670 = vmatprep.subr.bf16.mxu0 %v6314_v4  ;;  %v6332_v4 = vld [vmem:[%s7961_s2 + $0x370] sm:$0xff]  }
  0xaa   : > { %5967 = vmatmul.mubr.bf16.vlgmr.msra.gmra.mrb[0].mxu1 %v7378_v24 }
  0xab   : > { %2874 = vmatmul.mubr.bf16.vlgmr.msra.gmra.mrb[48].mxu0 %v2577_v52  ;;  %5975 = vmatpush3.bf16.msra.mxu1 %v6315_v16  ;;  %v6333_v16 = vld [vmem:[%s7961_s2 + $0x3b0] sm:$0xff]   ;;  %v6335_v52 = vld [vmem:[%s7961_s2 + $0x378] sm:$0xff]  }
  0xac   : > { %5671 = vmatpush3.bf16.msra.mxu0 %v6316_v49  ;;  %5976 = vmatprep.subr.bf16.mxu1 %v6318_v56  ;;  %v7499_v49 = vld.sshfl [vmem:[%s7446_s12 + $0x8] sm:$0x13 pattern:$0x76325410] }
  0xad   : > { %5672 = vmatprep.subr.bf16.mxu0 %v6317_v7  ;;  %2881 = vmatprep.mubr.bf16.mxu0 %v7394_v6 }
  0xae   : > { %5970 = vmatprep.mubr.bf16.mxu1 %v7398_v28 }
  0xaf   : > { %5977 = vmatpush3.bf16.msra.mxu1 %v6318_v56  ;;  %v7502_v56 = vld.sshfl [vmem:[%s7446_s12 + $0x2c] sm:$0x13 pattern:$0x76325410] }
  0xb0   : > { %5673 = vmatpush3.bf16.msra.mxu0 %v6319_v14  ;;  %5978 = vmatprep.subr.bf16.mxu1 %v6321_v31 }
  0xb1   : > { %5674 = vmatprep.subr.bf16.mxu0 %v6320_v2  ;;  %v3452_v2 = vshll.u32 %v3031_v23, 16 }
  0xb2   : > { %5971 = vmatmul.mubr.bf16.gmra.mrb[4].mxu1 %v7327_v63 }
  0xb3   : > { %2882 = vmatmul.mubr.bf16.gmra.mrb[52].mxu0 %v7416_v39  ;;  %5979 = vmatpush3.bf16.msra.mxu1 %v6321_v31  ;;  %v3449_v31 = vshrl.u32 %v3031_v23, 16  ;;  %v7539_v23 = vld.sshfl [vmem:[%s7446_s12] sm:$0x5f pattern:$0x76325410] }
  0xb4   : > { %5675 = vmatpush3.bf16.msra.mxu0 %v6322_v47  ;;  %5980 = vmatprep.subr.bf16.mxu1 %v6324_v19 }
  0xb5   : > { %5676 = vmatprep.subr.bf16.mxu0 %v6323_v10  ;;  %2889 = vmatprep.mubr.bf16.mxu0 %v7427_v22  ;;  %v3451_v10 = vrot.slane %v3449_v31, 6 }
  0xb6   : > { %5990 = vmatprep.mubr.bf16.mxu1 %v6997_v1  ;;  %v7461_v1 = vld.sshfl [vmem:[%s7446_s12 + $0xc] sm:$0x5f pattern:$0x76325410] }
  0xb7   : > { %5981 = vmatpush3.bf16.msra.mxu1 %v6324_v19  ;;  %v5356_v26 = vcombine.low %v7461_v1, %v7464_v43  ;;  %v3016_v35 = vcombine.low %v7461_v1, %v7480_v55  ;;  %v3417_v14 = vcombine.high %v7461_v1, %v7480_v55  ;;  %v6338_v19 = vld [vmem:[%s7961_s2 + $0x400] sm:$0xff]  }
  0xb8   : > { %5677 = vmatpush3.bf16.msra.mxu0 %v6325_v25  ;;  %5982 = vmatprep.subr.bf16.mxu1 %v6327_v32  ;;  %v3454_v25 = vrot.slane %v3452_v2, 7  ;;  %v6344_v2 = vld [vmem:[%s7961_s2 + $0x410] sm:$0xff]  }
  0xb9   : > { %5678 = vmatprep.subr.bf16.mxu0 %v6326_v21  ;;  %v3435_v7 = vshrl.u32 %v3016_v35, 16  ;;  %v3438_v27 = vshll.u32 %v3016_v35, 16  ;;  %v5207_v21 = vcombine.low %v7499_v49, %v7480_v55 }
  0xba   : > { %v3455_v35 = vor.u32 %v3454_v25, %v3451_v10  ;;  %v6347_v25 = vld [vmem:[%s7961_s2 + $0x418] sm:$0xff]  }
  0xbb   : > { %2890 = vmatmul.mubr.bf16.gmra.mrb[56].mxu0 %v7449_v41  ;;  %5983 = vmatpush3.bf16.msra.mxu1 %v6327_v32  ;;  %v3437_v20 = vrot.slane %v3435_v7, 6  ;;  %v3440_v47 = vrot.slane %v3438_v27, 7  ;;  %v6340_v32 = vld [vmem:[%s7961_s2 + $0x3c0] sm:$0xff]   ;;  %v6345_v27 = vld [vmem:[%s7961_s2 + $0x450] sm:$0xff]  }
  0xbc   : > { %5679 = vmatpush3.bf16.msra.mxu0 %v6328_v37  ;;  %5984 = vmatprep.subr.bf16.mxu1 %v6330_v33  ;;  %v5209_v37 = vcombine.low %v7483_v30, %v7502_v56 }
  0xbd   : > { %5680 = vmatprep.subr.bf16.mxu0 %v6329_v34  ;;  %2897 = vmatprep.mubr.bf16.mxu0 %v7320_v45  ;;  %v5357_v34 = vcombine.low %v7480_v55, %v7483_v30 }
  0xbf   : > { %5985 = vmatpush3.bf16.msra.mxu1 %v6330_v33  ;;  %v6342_v33 = vld [vmem:[%s7961_s2 + $0x448] sm:$0xff]  }
  0xc0   : > { %5681 = vmatpush3.bf16.msra.mxu0 %v6331_v53  ;;  %5986 = vmatprep.subr.bf16.mxu1 %v6333_v16  ;;  %v3444_v53 = vshll.u32 %v3417_v14, 16 }
  0xc1   : > { %5682 = vmatprep.subr.bf16.mxu0 %v6332_v4  ;;  %v6341_v4 = vld [vmem:[%s7961_s2 + $0x408] sm:$0xff]  }
  0xc2   : > { %v3446_v31 = vrot.slane %v3444_v53, 7  ;;  %v6350_v53 = vld [vmem:[%s7961_s2 + $0x420] sm:$0xff]  }
  0xc3   : > { %2898 = vmatmul.mubr.bf16.gmra.mrb[60].mxu0 %v7322_v57  ;;  %5987 = vmatpush3.bf16.msra.mxu1 %v6333_v16  ;;  %v3441_v16 = vor.u32 %v3440_v47, %v3437_v20  ;;  %v6346_v20 = vld [vmem:[%s7961_s2 + $0x3d0] sm:$0xff]   ;;  %v5206_v47 = vcombine.low %v7539_v23, %v7461_v1  ;;  %v6371_v1 = vld [vmem:[%s7961_s2 + $0x4d8] sm:$0xff]  }
  0xc4   : > { %5683 = vmatpush3.bf16.msra.mxu0 %v6334_v9  ;;  %5988 = vmatprep.subr.bf16.mxu1 %v6336_v50  ;;  %v6343_v9 = vld [vmem:[%s7961_s2 + $0x3c8] sm:$0xff]  }
  0xc5   : > { %5684 = vmatprep.subr.bf16.mxu0 %v6335_v52  ;;  %3310 = vmatprep.mubr.bf16.mxu0 %v7034_v58  ;;  %v3418_v58 = vcombine.high %v7464_v43, %v7483_v30  ;;  %v3127_v52 = vrot.slane %v5209_v37, %v6664_v38  ;;  %v3442_v14 = vrot.slane %v3441_v16, 2  ;;  %v6351_v16 = vld [vmem:[%s7961_s2 + $0x460] sm:$0xff]  }
  0xc7   : > { %5989 = vmatpush3.bf16.msra.mxu1 %v6336_v50  ;;  %v3113_v50 = vrot.slane %v5207_v21, %v6664_v38  ;;  %v3458_v7 = vshll.u32 %v3418_v58, 16 }
  0xc8   : > { %5685 = vmatpush3.bf16.msra.mxu0 %v6337_v11  ;;  %5998 = vmatprep.subr.bf16.mxu1 %v6339_v51  ;;  %v3456_v11 = vrot.slane %v3455_v35, 2 }
  0xc9   : > { %5722 = vmatprep.subr.bf16.mxu0 %v6338_v19  ;;  %v3001_v19 = vcombine.low %v7539_v23, %v7499_v49 }
  0xca   : > { %5991 = vmatmul.mubr.bf16.vlgmr.msra.gmra.mrb[0].mxu1 %v7043_v8  ;;  %v7548_v8 = vld.sshfl [vmem:[%s7446_s12 + $0x24] sm:$0x5f pattern:$0x76325410] }
  0xcb   : > { %3311 = vmatmul.mubr.bf16.vlgmr.msra.gmra.mrb[64].mxu0 %v7065_v13  ;;  %5999 = vmatpush3.bf16.msra.mxu1 %v6339_v51  ;;  %v3130_v13 = vcombine.low %v3113_v50, %v3127_v52  ;;  %v3460_v51 = vrot.slane %v3458_v7, 7  ;;  %v3046_v21 = vcombine.low %v7548_v8, %v7502_v56  ;;  %v3424_v35 = vshll.u32 %v3001_v19, 16  ;;  %v6352_v7 = vld [vmem:[%s7961_s2 + $0x3e0] sm:$0xff]  }
  0xcc   : > { %5723 = vmatpush3.bf16.msra.mxu0 %v6340_v32  ;;  %6000 = vmatprep.subr.bf16.mxu1 %v6342_v33  ;;  %v5208_v32 = vcombine.low %v7464_v43, %v7548_v8 }
  0xcd   : > { %5724 = vmatprep.subr.bf16.mxu0 %v6341_v4  ;;  %3318 = vmatprep.mubr.bf16.mxu0 %v7077_v59  ;;  %v6348_v59 = vld [vmem:[%s7961_s2 + $0x458] sm:$0xff]   ;;  %v7571_v10 = vsel %vm6629_vm6, %v3456_v11, %v3460_v51  ;;  %v3421_v4 = vshrl.u32 %v3001_v19, 16  ;;  %v3463_v50 = vshrl.u32 %v3046_v21, 16  ;;  %v3466_v52 = vshll.u32 %v3046_v21, 16  ;;  %v6358_v21 = vld [vmem:[%s7961_s2 + $0x3f0] sm:$0xff]  }
  0xce   : > { %5994 = vmatprep.mubr.bf16.mxu1 %v7063_v18  ;;  %v7567_v18 = vsel %vm6629_vm6, %v3442_v14, %v3446_v31  ;;  %v6353_v14 = vld [vmem:[%s7961_s2 + $0x428] sm:$0xff]   ;;  %v3416_v31 = vcombine.high %v7539_v23, %v7499_v49  ;;  %v3426_v11 = vrot.slane %v3424_v35, 7  ;;  %v3419_v51 = vcombine.high %v7548_v8, %v7502_v56  ;;  %v6357_v49 = vld [vmem:[%s7961_s2 + $0x470] sm:$0xff]  }
  0xcf   : > { %6001 = vmatpush3.bf16.msra.mxu1 %v6342_v33  ;;  %v4296_v37 = vcombine.high %v7567_v18, %v7571_v10  ;;  %v4295_v58 = vcombine.low %v7567_v18, %v7571_v10  ;;  %v6349_v33 = vld [vmem:[%s7961_s2 + $0x3d8] sm:$0xff]  }
  0xd0   : > { %5725 = vmatpush3.bf16.msra.mxu0 %v6343_v9  ;;  %6002 = vmatprep.subr.bf16.mxu1 %v6345_v27  ;;  %v3106_v9 = vrot.slane %v5206_v47, %v6664_v38  ;;  %v3468_v47 = vrot.slane %v3466_v52, 7  ;;  %v3430_v23 = vshll.u32 %v3416_v31, 16 }
  0xd1   : > { %5726 = vmatprep.subr.bf16.mxu0 %v6344_v2  ;;  %v3423_v2 = vrot.slane %v3421_v4, 6 }
  0xd2   : > { %5995 = vmatmul.mubr.bf16.gmra.mrb[4].mxu1 %v3130_v13  ;;  %v3432_v35 = vrot.slane %v3430_v23, 7  ;;  %v6369_v23 = vld [vmem:[%s7961_s2 + $0x510] sm:$0xff]  }
  0xd3   : > { %3319 = vmatmul.mubr.bf16.gmra.mrb[68].mxu0 %v7101_v42  ;;  %6003 = vmatpush3.bf16.msra.mxu1 %v6345_v27  ;;  %v3120_v42 = vrot.slane %v5208_v32, %v6664_v38  ;;  %v8027_v27 = vld [vmem:[#allocation6_spill] sm:$0xff]  ;;  %v3427_v19 = vor.u32 %v3426_v11, %v3423_v2 }
  0xd4   : > { %5727 = vmatpush3.bf16.msra.mxu0 %v6346_v20  ;;  %6004 = vmatprep.subr.bf16.mxu1 %v6348_v59  ;;  %v3465_v20 = vrot.slane %v3463_v50, 6  ;;  %v6364_v11 = vld [vmem:[%s7961_s2 + $0x480] sm:$0xff]  }
  0xd5   : > { %5728 = vmatprep.subr.bf16.mxu0 %v6347_v25  ;;  %3326 = vmatprep.mubr.bf16.mxu0 %v7112_v44  ;;  %v6354_v44 = vld [vmem:[%s7961_s2 + $0x468] sm:$0xff]   ;;  %v3129_v13 = vcombine.high %v3106_v9, %v3120_v42  ;;  %v6356_v25 = vld [vmem:[%s7961_s2 + $0x430] sm:$0xff]   ;;  %v3428_v4 = vrot.slane %v3427_v19, 2 }
  0xd6   : > { %6014 = vmatprep.mubr.bf16.mxu1 %v8027_v27  ;;  %v3469_v32 = vor.u32 %v3468_v47, %v3465_v20  ;;  %v6362_v27 = vld [vmem:[%s7961_s2 + $0x4c0] sm:$0xff]   ;;  %v6370_v19 = vld [vmem:[%s7961_s2 + $0x490] sm:$0xff]  }
  0xd7   : > { %6005 = vmatpush3.bf16.msra.mxu1 %v6348_v59  ;;  %v6355_v59 = vld [vmem:[%s7961_s2 + $0x3e8] sm:$0xff]  }
  0xd8   : > { %5729 = vmatpush3.bf16.msra.mxu0 %v6349_v33  ;;  %6006 = vmatprep.subr.bf16.mxu1 %v6351_v16  ;;  %v3128_v33 = vcombine.low %v3106_v9, %v3120_v42  ;;  %v3470_v50 = vrot.slane %v3469_v32, 2  ;;  %v6361_v9 = vld [vmem:[%s7961_s2 + $0x3f8] sm:$0xff]   ;;  %v6363_v42 = vld [vmem:[%s7961_s2 + $0x500] sm:$0xff]  }
  0xd9   : > { %5730 = vmatprep.subr.bf16.mxu0 %v6350_v53  ;;  %v6359_v53 = vld [vmem:[%s7961_s2 + $0x438] sm:$0xff]   ;;  %v5306_v32 = vld.sshfl [vmem:[%s7446_s12 + $0x30] sm:$0x5f pattern:$0x76325410] }
  0xdb   : > { %3327 = vmatmul.mubr.bf16.gmra.mrb[72].mxu0 %v7146_v48  ;;  %6007 = vmatpush3.bf16.msra.mxu1 %v6351_v16  ;;  %v3472_v48 = vshll.u32 %v3419_v51, 16  ;;  %v6360_v16 = vld [vmem:[%s7961_s2 + $0x478] sm:$0xff]   ;;  %v6365_v51 = vld [vmem:[%s7961_s2 + $0x4c8] sm:$0xff]  }
  0xdc   : > { %5731 = vmatpush3.bf16.msra.mxu0 %v6352_v7  ;;  %6008 = vmatprep.subr.bf16.mxu1 %v6354_v44  ;;  %v8028_v7 = vld [vmem:[#allocation7_spill] sm:$0xff] }
  0xdd   : > { %5732 = vmatprep.subr.bf16.mxu0 %v6353_v14  ;;  %3334 = vmatprep.mubr.bf16.mxu0 %v3129_v13  ;;  %v3474_v52 = vrot.slane %v3472_v48, 7  ;;  %v7642_v14 = vsel %vm6629_vm6, %v3428_v4, %v3432_v35  ;;  %v6366_v13 = vld [vmem:[%s7961_s2 + $0x508] sm:$0xff]  }
  0xde   : > { %v3526_v31 = vcombine.high %v7642_v14, %v7567_v18  ;;  %v3525_v43 = vcombine.low %v7642_v14, %v7567_v18  ;;  %v6374_v14 = vld [vmem:[%s7961_s2 + $0x4e0] sm:$0xff]  }
  0xdf   : > { %6009 = vmatpush3.bf16.msra.mxu1 %v6354_v44  ;;  %v7646_v44 = vsel %vm6629_vm6, %v3470_v50, %v3474_v52  ;;  %v6373_v52 = vld [vmem:[%s7961_s2 + $0x498] sm:$0xff]  }
  0xe0   : > { %5733 = vmatpush3.bf16.msra.mxu0 %v6355_v59  ;;  %6010 = vmatprep.subr.bf16.mxu1 %v6357_v49  ;;  %v3528_v2 = vcombine.high %v7571_v10, %v7646_v44  ;;  %v3542_v20 = vrot.slane %v3526_v31, %v6664_v38  ;;  %v8029_v59 = vld [vmem:[#allocation8_spill] sm:$0xff]  ;;  %v3535_v31 = vrot.slane %v3525_v43, %v6664_v38  ;;  %v6386_v43 = vld [vmem:[%s7961_s2 + $0x580] sm:$0xff]  }
  0xe1   : > { %5734 = vmatprep.subr.bf16.mxu0 %v6356_v25  ;;  %v6372_v25 = vld [vmem:[%s7961_s2 + $0x518] sm:$0xff]  }
  0xe2   : > { %v3556_v47 = vrot.slane %v3528_v2, %v6664_v38 }
  0xe3   : > { %3335 = vmatmul.mubr.bf16.gmra.mrb[76].mxu0 %v3128_v33  ;;  %6011 = vmatpush3.bf16.msra.mxu1 %v6357_v49  ;;  %v6367_v49 = vld [vmem:[%s7961_s2 + $0x488] sm:$0xff]   ;;  %v5307_v33 = vld.sshfl [vmem:[%s7446_s12 + $0x38] sm:$0x13 pattern:$0x76325410] }
  0xe4   : > { %5735 = vmatpush3.bf16.msra.mxu0 %v6358_v21  ;;  %6012 = vmatprep.subr.bf16.mxu1 %v6360_v16  ;;  %v3559_v48 = vcombine.low %v3542_v20, %v3556_v47  ;;  %v5358_v21 = vcombine.low %v7548_v8, %v5306_v32  ;;  %v4231_v4 = vcombine.high %v5306_v32, %v5307_v33  ;;  %v6378_v20 = vld [vmem:[%s7961_s2 + $0x528] sm:$0xff]  }
  0xe5   : > { %5736 = vmatprep.subr.bf16.mxu0 %v6359_v53  ;;  %3739 = vmatprep.mubr.bf16.mxu0 %v8028_v7  ;;  %v7695_v53 = vrot.slane %v5357_v34, %v6664_v38 }
  0xe6   : > { %v7706_v55 = vrot.slane %v5358_v21, %v6664_v38  ;;  %v4242_v8 = vshll.u32 %v4231_v4, 16  ;;  %v6385_v4 = vld [vmem:[%s7961_s2 + $0x4b8] sm:$0xff]  }
  0xe7   : > { %6013 = vmatpush3.bf16.msra.mxu1 %v6360_v16  ;;  %v5359_v16 = vcombine.low %v7502_v56, %v5307_v33 }
  0xe8   : > { %5737 = vmatpush3.bf16.msra.mxu0 %v6361_v9  ;;  %6022 = vmatprep.subr.bf16.mxu1 %v6363_v42  ;;  %v6375_v9 = vld [vmem:[%s7961_s2 + $0x520] sm:$0xff]  }
  0xe9   : > { %5774 = vmatprep.subr.bf16.mxu0 %v6362_v27  ;;  %v7709_v30 = vrot.slane %v5359_v16, %v6664_v38  ;;  %v8030_v27 = vld [vmem:[#allocation13_spill] sm:$0xff] }
  0xea   : > { %6015 = vmatmul.mubr.bf16.vlgmr.msra.gmra.mrb[0].mxu1 %v6919_v61  ;;  %v6368_v61 = vld [vmem:[%s7961_s2 + $0x4d0] sm:$0xff]   ;;  %v6383_v16 = vld [vmem:[%s7961_s2 + $0x4f8] sm:$0xff]  }
  0xeb   : > { %3740 = vmatmul.mubr.bf16.vlgmr.msra.gmra.mrb[80].mxu0 %v8029_v59  ;;  %6023 = vmatpush3.bf16.msra.mxu1 %v6363_v42  ;;  %v6377_v59 = vld [vmem:[%s7961_s2 + $0x4e8] sm:$0xff]  }
  0xec   : > { %5775 = vmatpush3.bf16.msra.mxu0 %v6364_v11  ;;  %6024 = vmatprep.subr.bf16.mxu1 %v6366_v13 }
  0xed   : > { %5776 = vmatprep.subr.bf16.mxu0 %v6365_v51  ;;  %3747 = vmatprep.mubr.bf16.mxu0 %v6891_v62  ;;  %v7688_v62 = vrot.slane %v5356_v26, %v6664_v38  ;;  %v3527_v26 = vcombine.low %v7571_v10, %v7646_v44  ;;  %v6376_v51 = vld [vmem:[%s7961_s2 + $0x4a0] sm:$0xff]  }
  0xee   : > { %6018 = vmatprep.mubr.bf16.mxu1 %v6975_v60  ;;  %v3861_v60 = vcombine.low %v5306_v32, %v5307_v33 }
  0xef   : > { %6025 = vmatpush3.bf16.msra.mxu1 %v6366_v13  ;;  %v3944_v35 = vcombine.high %v7688_v62, %v7706_v55  ;;  %v3943_v50 = vcombine.low %v7688_v62, %v7706_v55  ;;  %v3549_v2 = vrot.slane %v3527_v26, %v6664_v38  ;;  %v4244_v13 = vrot.slane %v4242_v8, 7  ;;  %v6388_v26 = vld [vmem:[%s7961_s2 + $0x540] sm:$0xff]  }
  0xf0   : > { %5777 = vmatpush3.bf16.msra.mxu0 %v6367_v49  ;;  %6026 = vmatprep.subr.bf16.mxu1 %v6369_v23  ;;  %v4233_v56 = vshrl.u32 %v3861_v60, 16  ;;  %v4236_v34 = vshll.u32 %v3861_v60, 16  ;;  %v6382_v60 = vld [vmem:[%s7961_s2 + $0x4b0] sm:$0xff]  }
  0xf1   : > { %5778 = vmatprep.subr.bf16.mxu0 %v6368_v61  ;;  %v8031_v61 = vld [vmem:[#allocation14_spill] sm:$0xff] }
  0xf2   : > { %6019 = vmatmul.mubr.bf16.gmra.mrb[4].mxu1 %v3559_v48  ;;  %v4235_v42 = vrot.slane %v4233_v56, 6  ;;  %v4238_v7 = vrot.slane %v4236_v34, 7  ;;  %v7755_v48 = vrot.slane %v4295_v58, %v6664_v38  ;;  %v3557_v58 = vcombine.low %v3535_v31, %v3549_v2  ;;  %v6390_v56 = vld [vmem:[%s7961_s2 + $0x5c8] sm:$0xff]  }
  0xf3   : > { %3748 = vmatmul.mubr.bf16.gmra.mrb[84].mxu0 %v6893_v46  ;;  %6027 = vmatpush3.bf16.msra.mxu1 %v6369_v23  ;;  %v3945_v46 = vcombine.low %v7695_v53, %v7709_v30  ;;  %v7746_v23 = vrot.slane %v4296_v37, %v6664_v38  ;;  %v6381_v37 = vld [vmem:[%s7961_s2 + $0x530] sm:$0xff]   ;;  %v6398_v53 = vld [vmem:[%s7961_s2 + $0x5a0] sm:$0xff]   ;;  %v6402_v30 = vld [vmem:[%s7961_s2 + $0x5e8] sm:$0xff]  }
  0xf4   : > { %5779 = vmatpush3.bf16.msra.mxu0 %v6370_v19  ;;  %6028 = vmatprep.subr.bf16.mxu1 %v6372_v25  ;;  %v4239_v11 = vor.u32 %v4238_v7, %v4235_v42  ;;  %v6391_v7 = vld [vmem:[%s7961_s2 + $0x548] sm:$0xff]  }
  0xf5   : > { %5780 = vmatprep.subr.bf16.mxu0 %v6371_v1  ;;  %3755 = vmatprep.mubr.bf16.mxu0 %v8030_v27  ;;  %v6387_v1 = vld [vmem:[%s7961_s2 + $0x5c0] sm:$0xff]   ;;  %v6393_v27 = vld [vmem:[%s7961_s2 + $0x5d0] sm:$0xff]  }
  0xf6   : > { %6038 = vmatprep.mubr.bf16.mxu1 %v7195_v40  ;;  %v4240_v47 = vrot.slane %v4239_v11, 2  ;;  %v3558_v40 = vcombine.high %v3535_v31, %v3549_v2  ;;  %v6396_v31 = vld [vmem:[%s7961_s2 + $0x5d8] sm:$0xff]   ;;  %v6399_v2 = vld [vmem:[%s7961_s2 + $0x5e0] sm:$0xff]  }
  0xf7   : > { %6029 = vmatpush3.bf16.msra.mxu1 %v6372_v25 }
  0xf8   : > { %5781 = vmatpush3.bf16.msra.mxu0 %v6373_v52  ;;  %6030 = vmatprep.subr.bf16.mxu1 %v6375_v9  ;;  %v4245_v49 = vsel %vm6629_vm6, %v4240_v47, %v4244_v13  ;;  %v6405_v47 = vld [vmem:[%s7961_s2 + $0x5f0] sm:$0xff]  }
  0xf9   : > { %5782 = vmatprep.subr.bf16.mxu0 %v6374_v14  ;;  %v4298_v19 = vcombine.high %v7646_v44, %v4245_v49  ;;  %v4297_v25 = vcombine.low %v7646_v44, %v4245_v49  ;;  %v6380_v44 = vld [vmem:[%s7961_s2 + $0x4f0] sm:$0xff]   ;;  %v6408_v49 = vld [vmem:[%s7961_s2 + $0x5f8] sm:$0xff]  }
  0xfb   : > { %3756 = vmatmul.mubr.bf16.gmra.mrb[88].mxu0 %v8031_v61  ;;  %6031 = vmatpush3.bf16.msra.mxu1 %v6375_v9  ;;  %v7767_v18 = vrot.slane %v4298_v19, %v6664_v38  ;;  %v7770_v10 = vrot.slane %v4297_v25, %v6664_v38  ;;  %v6384_v38 = vld [vmem:[%s7961_s2 + $0x538] sm:$0xff]  }
  0xfc   : > { %5783 = vmatpush3.bf16.msra.mxu0 %v6376_v51  ;;  %6032 = vmatprep.subr.bf16.mxu1 %v6378_v20  ;;  %v6409_v61 = vld [vmem:[%s7961_s2 + $0x578] sm:$0xff]  }
  0xfd   : > { %5784 = vmatprep.subr.bf16.mxu0 %v6377_v59  ;;  %3763 = vmatprep.mubr.bf16.mxu0 %v3558_v40  ;;  %v4329_v32 = vcombine.low %v7746_v23, %v7767_v18  ;;  %v4328_v21 = vcombine.high %v7755_v48, %v7770_v10  ;;  %v4327_v33 = vcombine.low %v7755_v48, %v7770_v10  ;;  %v6406_v40 = vld [vmem:[%s7961_s2 + $0x570] sm:$0xff]  }
  0xff   : > { %6033 = vmatpush3.bf16.msra.mxu1 %v6378_v20  ;;  %v6403_v20 = vld [vmem:[%s7961_s2 + $0x568] sm:$0xff]  }
 0x100   : > { %5785 = vmatpush3.bf16.msra.mxu0 %v6379_v0  ;;  %6034 = vmatprep.subr.bf16.mxu1 %v6381_v37 }
 0x101   : > { %5786 = vmatprep.subr.bf16.mxu0 %v6380_v44 }
 0x103   : > { %3764 = vmatmul.mubr.bf16.gmra.mrb[92].mxu0 %v3557_v58  ;;  %6035 = vmatpush3.bf16.msra.mxu1 %v6381_v37 }
 0x104   : > { %5787 = vmatpush3.bf16.msra.mxu0 %v6382_v60  ;;  %6036 = vmatprep.subr.bf16.mxu1 %v6384_v38 }
 0x105   : > { %5788 = vmatprep.subr.bf16.mxu0 %v6383_v16  ;;  %4125 = vmatprep.mubr.bf16.mxu0 %v7231_v54  ;;  %v6389_v54 = vld [vmem:[%s7961_s2 + $0x588] sm:$0xff]  }
 0x107   : > { %6037 = vmatpush3.bf16.msra.mxu1 %v6384_v38 }
 0x108   : > { %5789 = vmatpush3.bf16.msra.mxu0 %v6385_v4  ;;  %6046 = vmatprep.subr.bf16.mxu1 %v6387_v1 }
 0x109   : > { %v5478_v34 = vpop.f32.mrb[0].mxu0  ;;  %5826 = vmatprep.subr.bf16.mxu0 %v6386_v43 }
 0x10a   : > { %v5479_v8 = vpop.f32.mrb[1].mxu0  ;;  %6039 = vmatmul.mubr.bf16.vlgmr.msra.gmra.mrb[0].mxu1 %v7253_v29  ;;  %v6392_v29 = vld [vmem:[%s7961_s2 + $0x590] sm:$0xff]  }
 0x10b   : > { %v7807_v52 = vadd.f32 %v5479_v8, %v5478_v34  ;;  %v5481_v9 = vpop.f32.mrb[2].mxu0  ;;  %4126 = vmatmul.mubr.bf16.vlgmr.msra.gmra.mrb[96].mxu0 %v7272_v12  ;;  %6047 = vmatpush3.bf16.msra.mxu1 %v6387_v1  ;;  %v6394_v12 = vld [vmem:[%s7961_s2 + $0x550] sm:$0xff]  }
 0x10c   : > { %v5482_v42 = vpop.f32.mrb[3].mxu0  ;;  %5827 = vmatpush3.bf16.msra.mxu0 %v6388_v26  ;;  %6048 = vmatprep.subr.bf16.mxu1 %v6390_v56 }
 0x10d   : > { %v7816_v14 = vadd.f32 %v5482_v42, %v5481_v9  ;;  %5828 = vmatprep.subr.bf16.mxu0 %v6389_v54  ;;  %4133 = vmatprep.mubr.bf16.mxu0 %v7180_v5  ;;  %v6395_v5 = vld [vmem:[%s7961_s2 + $0x598] sm:$0xff]  }
 0x10e   : > { %6042 = vmatprep.mubr.bf16.mxu1 %v7269_v15  ;;  %v6397_v15 = vld [vmem:[%s7961_s2 + $0x558] sm:$0xff]  }
 0x10f   : > { %6049 = vmatpush3.bf16.msra.mxu1 %v6390_v56 }
 0x110   : > { %5829 = vmatpush3.bf16.msra.mxu0 %v6391_v7  ;;  %6050 = vmatprep.subr.bf16.mxu1 %v6393_v27 }
 0x111   : > { %5830 = vmatprep.subr.bf16.mxu0 %v6392_v29 }
 0x112   : > { %6043 = vmatmul.mubr.bf16.gmra.mrb[4].mxu1 %v3945_v46 }
 0x113   : > { %4134 = vmatmul.mubr.bf16.gmra.mrb[100].mxu0 %v7182_v3  ;;  %6051 = vmatpush3.bf16.msra.mxu1 %v6393_v27  ;;  %v6400_v3 = vld [vmem:[%s7961_s2 + $0x560] sm:$0xff]  }
 0x114   : > { %5831 = vmatpush3.bf16.msra.mxu0 %v6394_v12  ;;  %6052 = vmatprep.subr.bf16.mxu1 %v6396_v31 }
 0x115   : > { %5832 = vmatprep.subr.bf16.mxu0 %v6395_v5  ;;  %4141 = vmatprep.mubr.bf16.mxu0 %v7242_v36  ;;  %v6401_v36 = vld [vmem:[%s7961_s2 + $0x5a8] sm:$0xff]  }
 0x116   : > { %6062 = vmatprep.mubr.bf16.mxu1 %v7378_v24 }
 0x117   : > { %6053 = vmatpush3.bf16.msra.mxu1 %v6396_v31 }
 0x118   : > { %5833 = vmatpush3.bf16.msra.mxu0 %v6397_v15  ;;  %6054 = vmatprep.subr.bf16.mxu1 %v6399_v2  ;;  %v5484_v46 = vpop.f32.mrb[4].mxu0 }
 0x119   : > { %5834 = vmatprep.subr.bf16.mxu0 %v6398_v53  ;;  %v5485_v11 = vpop.f32.mrb[5].mxu0 }
 0x11a   : > { %v7856_v13 = vadd.f32 %v5485_v11, %v5484_v46  ;;  %v5487_v24 = vpop.f32.mrb[6].mxu0 }
 0x11b   : > { %4142 = vmatmul.mubr.bf16.gmra.mrb[104].mxu0 %v7244_v17  ;;  %6055 = vmatpush3.bf16.msra.mxu1 %v6399_v2  ;;  %v5488_v51 = vpop.f32.mrb[7].mxu0  ;;  %v6404_v17 = vld [vmem:[%s7961_s2 + $0x5b0] sm:$0xff]  }
 0x11c   : > { %5835 = vmatpush3.bf16.msra.mxu0 %v6400_v3  ;;  %6056 = vmatprep.subr.bf16.mxu1 %v6402_v30  ;;  %v5489_v59 = vadd.f32 %v5488_v51, %v5487_v24 }
 0x11d   : > { %5836 = vmatprep.subr.bf16.mxu0 %v6401_v36  ;;  %4149 = vmatprep.mubr.bf16.mxu0 %v3944_v35  ;;  %v6407_v35 = vld [vmem:[%s7961_s2 + $0x5b8] sm:$0xff]  }
 0x11f   : > { %6057 = vmatpush3.bf16.msra.mxu1 %v6402_v30 }
 0x120   : > { %5837 = vmatpush3.bf16.msra.mxu0 %v6403_v20  ;;  %6058 = vmatprep.subr.bf16.mxu1 %v6405_v47 }
 0x121   : > { %5838 = vmatprep.subr.bf16.mxu0 %v6404_v17 }
 0x123   : > { %4150 = vmatmul.mubr.bf16.gmra.mrb[108].mxu0 %v3943_v50  ;;  %6059 = vmatpush3.bf16.msra.mxu1 %v6405_v47 }
 0x124   : > { %5839 = vmatpush3.bf16.msra.mxu0 %v6406_v40  ;;  %6060 = vmatprep.subr.bf16.mxu1 %v6408_v49 }
 0x125   : > { %5840 = vmatprep.subr.bf16.mxu0 %v6407_v35  ;;  %4509 = vmatprep.mubr.bf16.mxu0 %v7394_v6 }
 0x126   : > { %v5490_v19 = vpop.f32.mrb[8].mxu0 }
 0x127   : > { %6061 = vmatpush3.bf16.msra.mxu1 %v6408_v49  ;;  %v5491_v25 = vpop.f32.mrb[9].mxu0 }
 0x128   : > { %5841 = vmatpush3.bf16.msra.mxu0 %v6409_v61  ;;  %v5492_v0 = vadd.f32 %v5491_v25, %v5490_v19  ;;  %v5493_v37 = vpop.f32.mrb[10].mxu0 }
 0x129   : > { %v5494_v62 = vpop.f32.mrb[11].mxu0 }
 0x12a   : > { %6063 = vmatmul.mubr.bf16.vlgmr.msra.gmra.mrb[0].mxu1 %v7398_v28  ;;  %v5495_v55 = vadd.f32 %v5494_v62, %v5493_v37 }
 0x12b   : > { %4510 = vmatmul.mubr.bf16.vlgmr.msra.gmra.mrb[112].mxu0 %v7416_v39  ;;  %6066 = vmatprep.mubr.bf16.mxu1 %v7327_v63 }
 0x12c   : > { %4517 = vmatprep.mubr.bf16.mxu0 %v7427_v22 }
 0x132   : > { %6067 = vmatmul.mubr.bf16.gmra.mrb[4].mxu1 %v4329_v32 }
 0x133   : > { %4518 = vmatmul.mubr.bf16.gmra.mrb[116].mxu0 %v7449_v41 }
 0x134   : > { %4525 = vmatprep.mubr.bf16.mxu0 %v7320_v45 }
 0x136   : > { %v5496_v6 = vpop.f32.mrb[12].mxu0 }
 0x137   : > { %v5497_v50 = vpop.f32.mrb[13].mxu0 }
 0x138   : > { %v5498_v44 = vadd.f32 %v5497_v50, %v5496_v6  ;;  %v5499_v28 = vpop.f32.mrb[14].mxu0 }
 0x139   : > { %v5500_v58 = vpop.f32.mrb[15].mxu0 }
 0x13a   : > { %v5501_v60 = vadd.f32 %v5500_v58, %v5499_v28 }
 0x13b   : > { %4526 = vmatmul.mubr.bf16.gmra.mrb[120].mxu0 %v7322_v57 }
 0x13c   : > { %4533 = vmatprep.mubr.bf16.mxu0 %v4328_v21 }
 0x13e   : > { %v5530_v63 = vpop.f32.mrb[16].mxu0 }
 0x13f   : > { %v5531_v39 = vpop.f32.mrb[17].mxu0 }
 0x140   : > { %v5532_v22 = vadd.f32 %v5531_v39, %v5530_v63  ;;  %v5533_v23 = vpop.f32.mrb[18].mxu0 }
 0x141   : > { %v5534_v18 = vpop.f32.mrb[19].mxu0 }
 0x142   : > { %v6078_v41 = vadd.f32 %v5532_v22, %v7807_v52  ;;  %v5535_v45 = vadd.f32 %v5534_v18, %v5533_v23 }
 0x143   : > { %4534 = vmatmul.mubr.bf16.gmra.mrb[124].mxu0 %v4327_v33 }
 0x144   : > { %v6094_v32 = vadd.f32 %v5535_v45, %v7816_v14 }
 0x146   : > { %v5536_v38 = vpop.f32.mrb[20].mxu0 }
 0x147   : > { %v5537_v57 = vpop.f32.mrb[21].mxu0 }
 0x148   : > { %v5538_v16 = vadd.f32 %v5537_v57, %v5536_v38  ;;  %v5539_v4 = vpop.f32.mrb[22].mxu0 }
 0x149   : > { %v5540_v1 = vpop.f32.mrb[23].mxu0 }
 0x14a   : > { %v6070_v21 = vadd.f32 %v5538_v16, %v7856_v13  ;;  %v5541_v43 = vadd.f32 %v5540_v1, %v5539_v4 }
 0x14c   : > { %v6086_v26 = vadd.f32 %v5541_v43, %v5489_v59 }
 0x14e   : > { %v5542_v56 = vpop.f32.mrb[24].mxu0 }
 0x14f   : > { %v5543_v34 = vpop.f32.mrb[25].mxu0 }
 0x150   : > { %v5544_v54 = vadd.f32 %v5543_v34, %v5542_v56  ;;  %v5545_v8 = vpop.f32.mrb[26].mxu0 }
 0x151   : > { %v5546_v52 = vpop.f32.mrb[27].mxu0 }
 0x152   : > { %v6110_v9 = vadd.f32 %v5544_v54, %v5492_v0  ;;  %v5547_v42 = vadd.f32 %v5546_v52, %v5545_v8 }
 0x154   : > { %v6126_v48 = vadd.f32 %v5547_v42, %v5495_v55 }
 0x156   : > { %v5548_v10 = vpop.f32.mrb[28].mxu0 }
 0x157   : > { %v5549_v33 = vpop.f32.mrb[29].mxu0 }
 0x158   : > { %v5550_v7 = vadd.f32 %v5549_v33, %v5548_v10  ;;  %v5551_v27 = vpop.f32.mrb[30].mxu0 }
 0x159   : > { %v5552_v14 = vpop.f32.mrb[31].mxu0 }
 0x15a   : > { %v6102_v29 = vadd.f32 %v5550_v7, %v5498_v44  ;;  %v5553_v12 = vadd.f32 %v5552_v14, %v5551_v27 }
 0x15c   : > { %v6118_v31 = vadd.f32 %v5553_v12, %v5501_v60 }
 0x15e   : > { %v5582_v5 = vpop.f32.mrb[32].mxu0 }
 0x15f   : > { %v5583_v15 = vpop.f32.mrb[33].mxu0 }
 0x160   : > { %v5584_v2 = vadd.f32 %v5583_v15, %v5582_v5  ;;  %v5585_v53 = vpop.f32.mrb[34].mxu0 }
 0x161   : > { %v5586_v3 = vpop.f32.mrb[35].mxu0 }
 0x162   : > { %v6079_v30 = vadd.f32 %v6078_v41, %v5584_v2  ;;  %v5587_v46 = vadd.f32 %v5586_v3, %v5585_v53 }
 0x164   : > { %v6095_v36 = vadd.f32 %v6094_v32, %v5587_v46 }
 0x166   : > { %v5588_v11 = vpop.f32.mrb[36].mxu0 }
 0x167   : > { %v5589_v13 = vpop.f32.mrb[37].mxu0 }
 0x168   : > { %v5590_v24 = vadd.f32 %v5589_v13, %v5588_v11  ;;  %v5591_v51 = vpop.f32.mrb[38].mxu0 }
 0x169   : > { %v5592_v20 = vpop.f32.mrb[39].mxu0 }
 0x16a   : > { %v6071_v47 = vadd.f32 %v6070_v21, %v5590_v24  ;;  %v5593_v59 = vadd.f32 %v5592_v20, %v5591_v51 }
 0x16c   : > { %v6087_v17 = vadd.f32 %v6086_v26, %v5593_v59 }
 0x16e   : > { %v5594_v40 = vpop.f32.mrb[40].mxu0 }
 0x16f   : > { %v5595_v49 = vpop.f32.mrb[41].mxu0 }
 0x170   : > { %v5596_v35 = vadd.f32 %v5595_v49, %v5594_v40  ;;  %v5597_v61 = vpop.f32.mrb[42].mxu0 }
 0x171   : > { %v5598_v19 = vpop.f32.mrb[43].mxu0 }
 0x172   : > { %v6111_v25 = vadd.f32 %v6110_v9, %v5596_v35  ;;  %v5599_v0 = vadd.f32 %v5598_v19, %v5597_v61 }
 0x174   : > { %v6127_v37 = vadd.f32 %v6126_v48, %v5599_v0 }
 0x176   : > { %v5600_v62 = vpop.f32.mrb[44].mxu0 }
 0x177   : > { %v5601_v55 = vpop.f32.mrb[45].mxu0 }
 0x178   : > { %v5602_v6 = vadd.f32 %v5601_v55, %v5600_v62  ;;  %v5603_v50 = vpop.f32.mrb[46].mxu0 }
 0x179   : > { %v5604_v44 = vpop.f32.mrb[47].mxu0 }
 0x17a   : > { %v6103_v28 = vadd.f32 %v6102_v29, %v5602_v6  ;;  %v5605_v58 = vadd.f32 %v5604_v44, %v5603_v50 }
 0x17c   : > { %v6119_v60 = vadd.f32 %v6118_v31, %v5605_v58 }
 0x17e   : > { %v5634_v63 = vpop.f32.mrb[48].mxu0 }
 0x17f   : > { %v5635_v39 = vpop.f32.mrb[49].mxu0 }
 0x180   : > { %v5636_v22 = vadd.f32 %v5635_v39, %v5634_v63  ;;  %v5637_v23 = vpop.f32.mrb[50].mxu0 }
 0x181   : > { %v5638_v18 = vpop.f32.mrb[51].mxu0 }
 0x182   : > { %v6080_v41 = vadd.f32 %v6079_v30, %v5636_v22  ;;  %v5639_v45 = vadd.f32 %v5638_v18, %v5637_v23 }
 0x184   : > { %v6096_v32 = vadd.f32 %v6095_v36, %v5639_v45 }
 0x186   : > { %v5640_v38 = vpop.f32.mrb[52].mxu0 }
 0x187   : > { %v5641_v57 = vpop.f32.mrb[53].mxu0 }
 0x188   : > { %v5642_v16 = vadd.f32 %v5641_v57, %v5640_v38  ;;  %v5643_v4 = vpop.f32.mrb[54].mxu0 }
 0x189   : > { %v5644_v1 = vpop.f32.mrb[55].mxu0 }
 0x18a   : > { %v6072_v21 = vadd.f32 %v6071_v47, %v5642_v16  ;;  %v5645_v43 = vadd.f32 %v5644_v1, %v5643_v4 }
 0x18c   : > { %v6088_v26 = vadd.f32 %v6087_v17, %v5645_v43 }
 0x18e   : > { %v5646_v56 = vpop.f32.mrb[56].mxu0 }
 0x18f   : > { %v5647_v34 = vpop.f32.mrb[57].mxu0 }
 0x190   : > { %v5648_v54 = vadd.f32 %v5647_v34, %v5646_v56  ;;  %v5649_v8 = vpop.f32.mrb[58].mxu0 }
 0x191   : > { %v5650_v52 = vpop.f32.mrb[59].mxu0 }
 0x192   : > { %v6112_v9 = vadd.f32 %v6111_v25, %v5648_v54  ;;  %v5651_v42 = vadd.f32 %v5650_v52, %v5649_v8 }
 0x194   : > { %v6128_v48 = vadd.f32 %v6127_v37, %v5651_v42 }
 0x196   : > { %v5652_v10 = vpop.f32.mrb[60].mxu0 }
 0x197   : > { %v5653_v33 = vpop.f32.mrb[61].mxu0 }
 0x198   : > { %v5654_v7 = vadd.f32 %v5653_v33, %v5652_v10  ;;  %v5655_v27 = vpop.f32.mrb[62].mxu0 }
 0x199   : > { %v5656_v14 = vpop.f32.mrb[63].mxu0 }
 0x19a   : > { %v6104_v29 = vadd.f32 %v6103_v28, %v5654_v7  ;;  %v5657_v12 = vadd.f32 %v5656_v14, %v5655_v27 }
 0x19c   : > { %v6120_v31 = vadd.f32 %v6119_v60, %v5657_v12 }
 0x19e   : > { %v5686_v5 = vpop.f32.mrb[64].mxu0 }
 0x19f   : > { %v5687_v15 = vpop.f32.mrb[65].mxu0 }
 0x1a0   : > { %v5688_v2 = vadd.f32 %v5687_v15, %v5686_v5  ;;  %v5689_v53 = vpop.f32.mrb[66].mxu0 }
 0x1a1   : > { %v5690_v3 = vpop.f32.mrb[67].mxu0 }
 0x1a2   : > { %v6081_v30 = vadd.f32 %v6080_v41, %v5688_v2  ;;  %v5691_v46 = vadd.f32 %v5690_v3, %v5689_v53 }
 0x1a4   : > { %v6097_v36 = vadd.f32 %v6096_v32, %v5691_v46 }
 0x1a6   : > { %v5692_v11 = vpop.f32.mrb[68].mxu0 }
 0x1a7   : > { %v5693_v13 = vpop.f32.mrb[69].mxu0 }
 0x1a8   : > { %v5694_v24 = vadd.f32 %v5693_v13, %v5692_v11  ;;  %v5695_v51 = vpop.f32.mrb[70].mxu0 }
 0x1a9   : > { %v5696_v20 = vpop.f32.mrb[71].mxu0 }
 0x1aa   : > { %v6073_v47 = vadd.f32 %v6072_v21, %v5694_v24  ;;  %v5697_v59 = vadd.f32 %v5696_v20, %v5695_v51 }
 0x1ac   : > { %v6089_v17 = vadd.f32 %v6088_v26, %v5697_v59 }
 0x1ae   : > { %v5698_v40 = vpop.f32.mrb[72].mxu0 }
 0x1af   : > { %v5699_v49 = vpop.f32.mrb[73].mxu0 }
 0x1b0   : > { %v5700_v35 = vadd.f32 %v5699_v49, %v5698_v40  ;;  %v5701_v61 = vpop.f32.mrb[74].mxu0 }
 0x1b1   : > { %v5702_v19 = vpop.f32.mrb[75].mxu0 }
 0x1b2   : > { %v6113_v25 = vadd.f32 %v6112_v9, %v5700_v35  ;;  %v5703_v0 = vadd.f32 %v5702_v19, %v5701_v61 }
 0x1b4   : > { %v6129_v37 = vadd.f32 %v6128_v48, %v5703_v0 }
 0x1b6   : > { %v5704_v62 = vpop.f32.mrb[76].mxu0 }
 0x1b7   : > { %v5705_v55 = vpop.f32.mrb[77].mxu0 }
 0x1b8   : > { %v5706_v6 = vadd.f32 %v5705_v55, %v5704_v62  ;;  %v5707_v50 = vpop.f32.mrb[78].mxu0 }
 0x1b9   : > { %v5708_v44 = vpop.f32.mrb[79].mxu0 }
 0x1ba   : > { %v6105_v28 = vadd.f32 %v6104_v29, %v5706_v6  ;;  %v5709_v58 = vadd.f32 %v5708_v44, %v5707_v50 }
 0x1bc   : > { %v6121_v60 = vadd.f32 %v6120_v31, %v5709_v58 }
 0x1be   : > { %v5738_v63 = vpop.f32.mrb[80].mxu0 }
 0x1bf   : > { %v5739_v39 = vpop.f32.mrb[81].mxu0 }
 0x1c0   : > { %v5740_v22 = vadd.f32 %v5739_v39, %v5738_v63  ;;  %v5741_v23 = vpop.f32.mrb[82].mxu0 }
 0x1c1   : > { %v5742_v18 = vpop.f32.mrb[83].mxu0 }
 0x1c2   : > { %v6082_v41 = vadd.f32 %v6081_v30, %v5740_v22  ;;  %v5743_v45 = vadd.f32 %v5742_v18, %v5741_v23 }
 0x1c4   : > { %v6098_v32 = vadd.f32 %v6097_v36, %v5743_v45 }
 0x1c6   : > { %v5744_v38 = vpop.f32.mrb[84].mxu0 }
 0x1c7   : > { %v5745_v57 = vpop.f32.mrb[85].mxu0 }
 0x1c8   : > { %v5746_v16 = vadd.f32 %v5745_v57, %v5744_v38  ;;  %v5747_v4 = vpop.f32.mrb[86].mxu0 }
 0x1c9   : > { %v5748_v1 = vpop.f32.mrb[87].mxu0 }
 0x1ca   : > { %v6074_v21 = vadd.f32 %v6073_v47, %v5746_v16  ;;  %v5749_v43 = vadd.f32 %v5748_v1, %v5747_v4  ;;  %v7916_v4 = vld [vmem:[%s7962_s3] ss:$0 sm:$0xff] }
 0x1cc   : > { %v6090_v26 = vadd.f32 %v6089_v17, %v5749_v43 }
 0x1ce   : > { %v5750_v56 = vpop.f32.mrb[88].mxu0 }
 0x1cf   : > { %v5751_v34 = vpop.f32.mrb[89].mxu0 }
 0x1d0   : > { %v5752_v54 = vadd.f32 %v5751_v34, %v5750_v56  ;;  %v5753_v8 = vpop.f32.mrb[90].mxu0 }
 0x1d1   : > { %v5754_v52 = vpop.f32.mrb[91].mxu0 }
 0x1d2   : > { %v6114_v9 = vadd.f32 %v6113_v25, %v5752_v54  ;;  %v5755_v42 = vadd.f32 %v5754_v52, %v5753_v8 }
 0x1d4   : > { %v6130_v48 = vadd.f32 %v6129_v37, %v5755_v42 }
 0x1d6   : > { %v5756_v10 = vpop.f32.mrb[92].mxu0 }
 0x1d7   : > { %v5757_v33 = vpop.f32.mrb[93].mxu0 }
 0x1d8   : > { %v5758_v7 = vadd.f32 %v5757_v33, %v5756_v10  ;;  %v5759_v27 = vpop.f32.mrb[94].mxu0 }
 0x1d9   : > { %v5760_v14 = vpop.f32.mrb[95].mxu0 }
 0x1da   : > { %v6106_v29 = vadd.f32 %v6105_v28, %v5758_v7  ;;  %v5761_v12 = vadd.f32 %v5760_v14, %v5759_v27 }
 0x1dc   : > { %v6122_v31 = vadd.f32 %v6121_v60, %v5761_v12 }
 0x1de   : > { %v5790_v5 = vpop.f32.mrb[96].mxu0 }
 0x1df   : > { %v5791_v15 = vpop.f32.mrb[97].mxu0 }
 0x1e0   : > { %v5792_v2 = vadd.f32 %v5791_v15, %v5790_v5  ;;  %v5793_v53 = vpop.f32.mrb[98].mxu0 }
 0x1e1   : > { %v5794_v3 = vpop.f32.mrb[99].mxu0 }
 0x1e2   : > { %v6083_v30 = vadd.f32 %v6082_v41, %v5792_v2  ;;  %v5795_v46 = vadd.f32 %v5794_v3, %v5793_v53 }
 0x1e4   : > { %v6099_v36 = vadd.f32 %v6098_v32, %v5795_v46 }
 0x1e6   : > { %v5796_v11 = vpop.f32.mrb[100].mxu0 }
 0x1e7   : > { %v5797_v13 = vpop.f32.mrb[101].mxu0 }
 0x1e8   : > { %v5798_v24 = vadd.f32 %v5797_v13, %v5796_v11  ;;  %v5799_v51 = vpop.f32.mrb[102].mxu0 }
 0x1e9   : > { %v5800_v20 = vpop.f32.mrb[103].mxu0 }
 0x1ea   : > { %v6075_v47 = vadd.f32 %v6074_v21, %v5798_v24  ;;  %v5801_v59 = vadd.f32 %v5800_v20, %v5799_v51 }
 0x1ec   : > { %v6091_v17 = vadd.f32 %v6090_v26, %v5801_v59 }
 0x1ee   : > { %v5802_v40 = vpop.f32.mrb[104].mxu0 }
 0x1ef   : > { %v5803_v49 = vpop.f32.mrb[105].mxu0 }
 0x1f0   : > { %v5804_v35 = vadd.f32 %v5803_v49, %v5802_v40  ;;  %v5805_v61 = vpop.f32.mrb[106].mxu0 }
 0x1f1   : > { %v5806_v19 = vpop.f32.mrb[107].mxu0 }
 0x1f2   : > { %v6115_v25 = vadd.f32 %v6114_v9, %v5804_v35  ;;  %v5807_v0 = vadd.f32 %v5806_v19, %v5805_v61 }
 0x1f4   : > { %v7906_v37 = vadd.f32 %v6130_v48, %v5807_v0 }
 0x1f6   : > { %v5808_v62 = vpop.f32.mrb[108].mxu0 }
 0x1f7   : > { %v5809_v55 = vpop.f32.mrb[109].mxu0 }
 0x1f8   : > { %v5810_v6 = vadd.f32 %v5809_v55, %v5808_v62  ;;  %v5811_v50 = vpop.f32.mrb[110].mxu0 }
 0x1f9   : > { %v5812_v44 = vpop.f32.mrb[111].mxu0 }
 0x1fa   : > { %v7908_v28 = vadd.f32 %v6106_v29, %v5810_v6  ;;  %v5813_v58 = vadd.f32 %v5812_v44, %v5811_v50 }
 0x1fc   : > { %v7910_v60 = vadd.f32 %v6122_v31, %v5813_v58 }
 0x1fd   : > { %v6064_v63 = vpop.f32.mrb[0].mxu1 }
 0x1fe   : > { %v5842_v39 = vpop.f32.mrb[112].mxu0  ;;  %v4576_v22 = vpop.f32.mrb[1].mxu1 }
 0x1ff   : > { %v5843_v23 = vpop.f32.mrb[113].mxu0  ;;  %v6065_v18 = vpop.f32.mrb[2].mxu1 }
 0x200   : > { %v5844_v41 = vadd.f32 %v5843_v23, %v5842_v39  ;;  %v5845_v45 = vpop.f32.mrb[114].mxu0  ;;  %v4579_v32 = vpop.f32.mrb[3].mxu1 }
 0x201   : > { %v5846_v38 = vpop.f32.mrb[115].mxu0 }
 0x202   : > { %v6084_v57 = vadd.f32 %v6083_v30, %v5844_v41  ;;  %v5847_v16 = vadd.f32 %v5846_v38, %v5845_v45 }
 0x204   : > { %v6085_v1 = vadd.f32 %v6084_v57, %v4576_v22  ;;  %v6100_v21 = vadd.f32 %v6099_v36, %v5847_v16 }
 0x205   : > { %v6068_v43 = vpop.f32.mrb[4].mxu1 }
 0x206   : > { %v4622_v26 = vadd.f32 %v6085_v1, %v7916_v4  ;;  %v6101_v56 = vadd.f32 %v6100_v21, %v4579_v32  ;;  %v5848_v34 = vpop.f32.mrb[116].mxu0  ;;  %v4592_v54 = vpop.f32.mrb[5].mxu1 }
 0x207   : > { %v5849_v8 = vpop.f32.mrb[117].mxu0  ;;  %v6069_v52 = vpop.f32.mrb[6].mxu1 }
 0x208   : > { %v4638_v9 = vcombine.high %v4622_v26, %v4622_v26  ;;  %4654 = vst [vmem:[%s7921_s10] sm:$0xf] %v4622_v26  ;;  %v4623_v42 = vadd.f32 %v6101_v56, %v7916_v4  ;;  %v5850_v48 = vadd.f32 %v5849_v8, %v5848_v34  ;;  %v5851_v10 = vpop.f32.mrb[118].mxu0  ;;  %v4595_v33 = vpop.f32.mrb[7].mxu1 }
 0x209   : > { %v5852_v7 = vpop.f32.mrb[119].mxu0 }
 0x20a   : > { %4655 = vst [vmem:[%s7921_s10 + $0x4] sm:$0xf] %v4638_v9  ;;  %v4639_v27 = vcombine.high %v4623_v42, %v4623_v42  ;;  %4656 = vst [vmem:[%s7921_s10 + $0x8] sm:$0xf] %v4623_v42  ;;  %v6076_v14 = vadd.f32 %v6075_v47, %v5850_v48  ;;  %v5853_v29 = vadd.f32 %v5852_v7, %v5851_v10 }
 0x20c   : > { %4657 = vst [vmem:[%s7921_s10 + $0xc] sm:$0xf] %v4639_v27  ;;  %v6077_v12 = vadd.f32 %v6076_v14, %v6064_v63  ;;  %v6092_v31 = vadd.f32 %v6091_v17, %v5853_v29 }
 0x20e   : > { %v4624_v5 = vadd.f32 %v6077_v12, %v7916_v4  ;;  %v6093_v15 = vadd.f32 %v6092_v31, %v6065_v18  ;;  %v5854_v2 = vpop.f32.mrb[120].mxu0 }
 0x20f   : > { %v5855_v53 = vpop.f32.mrb[121].mxu0 }
 0x210   : > { %v4640_v3 = vcombine.high %v4624_v5, %v4624_v5  ;;  %4658 = vst [vmem:[%s7921_s10 + $0x10] sm:$0xf] %v4624_v5  ;;  %v4625_v30 = vadd.f32 %v6093_v15, %v7916_v4  ;;  %v5856_v46 = vadd.f32 %v5855_v53, %v5854_v2  ;;  %v5857_v36 = vpop.f32.mrb[122].mxu0 }
 0x211   : > { %v5858_v11 = vpop.f32.mrb[123].mxu0 }
 0x212   : > { %4659 = vst [vmem:[%s7921_s10 + $0x14] sm:$0xf] %v4640_v3  ;;  %v4641_v13 = vcombine.high %v4625_v30, %v4625_v30  ;;  %4660 = vst [vmem:[%s7921_s10 + $0x18] sm:$0xf] %v4625_v30  ;;  %v6116_v24 = vadd.f32 %v6115_v25, %v5856_v46  ;;  %v5859_v51 = vadd.f32 %v5858_v11, %v5857_v36 }
 0x214   : > { %4661 = vst [vmem:[%s7921_s10 + $0x1c] sm:$0xf] %v4641_v13  ;;  %v6117_v20 = vadd.f32 %v6116_v24, %v4592_v54  ;;  %v6132_v47 = vadd.f32 %v7906_v37, %v5859_v51 }
 0x216   : > { %v4626_v59 = vadd.f32 %v6117_v20, %v7916_v4  ;;  %v6133_v17 = vadd.f32 %v6132_v47, %v4595_v33  ;;  %v5860_v40 = vpop.f32.mrb[124].mxu0 }
 0x217   : > { %v5861_v49 = vpop.f32.mrb[125].mxu0 }
 0x218   : > { %v4642_v35 = vcombine.high %v4626_v59, %v4626_v59  ;;  %4662 = vst [vmem:[%s7921_s10 + $0x20] sm:$0xf] %v4626_v59  ;;  %v4627_v61 = vadd.f32 %v6133_v17, %v7916_v4  ;;  %v5862_v19 = vadd.f32 %v5861_v49, %v5860_v40  ;;  %v5863_v25 = vpop.f32.mrb[126].mxu0 }
 0x219   : > { %v5864_v0 = vpop.f32.mrb[127].mxu0 }
 0x21a   : > { %4663 = vst [vmem:[%s7921_s10 + $0x24] sm:$0xf] %v4642_v35  ;;  %v4643_v62 = vcombine.high %v4627_v61, %v4627_v61  ;;  %4664 = vst [vmem:[%s7921_s10 + $0x28] sm:$0xf] %v4627_v61  ;;  %v6108_v37 = vadd.f32 %v7908_v28, %v5862_v19  ;;  %v5865_v55 = vadd.f32 %v5864_v0, %v5863_v25 }
 0x21c   : > { %4665 = vst [vmem:[%s7921_s10 + $0x2c] sm:$0xf] %v4643_v62  ;;  %v6109_v6 = vadd.f32 %v6108_v37, %v6068_v43  ;;  %v6124_v50 = vadd.f32 %v7910_v60, %v5865_v55 }
 0x21e   : > { %v4628_v44 = vadd.f32 %v6109_v6, %v7916_v4  ;;  %v6125_v58 = vadd.f32 %v6124_v50, %v6069_v52 }
 0x220   : > { %v4644_v63 = vcombine.high %v4628_v44, %v4628_v44  ;;  %4666 = vst [vmem:[%s7921_s10 + $0x30] sm:$0xf] %v4628_v44  ;;  %v4629_v39 = vadd.f32 %v6125_v58, %v7916_v4 }
 0x222   : > { %4667 = vst [vmem:[%s7921_s10 + $0x34] sm:$0xf] %v4644_v63  ;;  %v4645_v22 = vcombine.high %v4629_v39, %v4629_v39  ;;  %4668 = vst [vmem:[%s7921_s10 + $0x38] sm:$0xf] %v4629_v39 }
 0x224   : > { %4669 = vst [vmem:[%s7921_s10 + $0x3c] sm:$0xf] %v4645_v22 }
 0x225 PF: > { %s14_s17 = sadd.s32 1, %s6433_s17   ;;  %s8032_s15 = smov %s6429_s16 }
 0x226   : > { %p11_p5 = scmp.ge.s32.totalorder %s14_s17, 4   ;;  %s8033_s16 = smov %s8035_s18 }
 0x228   :  { %13 = sbr.rel (!%p11_p5) target bundleno = 2 (0x2), region = 82 }

</bundles_post_ra>
